<compile_context>
chip_gen: v7x
topology: tpu7x:2x2x1
jax: 0.10.0
libtpu: 0.0.40
codegen_flags: <defaults>
</compile_context>

<pallas_src>
import jax
import jax.numpy as jnp
from jax import lax
from jax.experimental import pallas as pl
from jax.experimental.pallas import tpu as pltpu

TEMPERATURE = 0.07
BASE_TEMPERATURE = 0.07
LANE = 128
NUM_CLASS_PAD = 128  # one-hot width for the in-kernel label-equality matmul


def _round_up(x, m):
    return (x + m - 1) // m * m


# ---------------------------------------------------------------------------
# Fused kernel: both 5-Linear branches + SupConLoss, single invocation.
# ---------------------------------------------------------------------------
def _fused_supcon_kernel(
        y_ref, x1_ref, x2_ref,
        w1a_ref, b1a_ref, w2a_ref, b2a_ref, w3a_ref, b3a_ref,
        w4a_ref, b4a_ref, w5a_ref, b5a_ref,
        w1b_ref, b1b_ref, w2b_ref, b2b_ref, w3b_ref, b3b_ref,
        w4b_ref, b4b_ref, w5b_ref, b5b_ref,
        loss_ref):
    """
    y_ref   : (B, 1) int32   raw labels (column orientation, = y.T[0])
    x*_ref  : (B, x_dim) f32 raw, unpadded inputs
    w1*_ref : (x_dim, 128) f32      layer-1 weights (raw in-dim, padded out-dim)
    w2..5*  : (128, 128) bf16       zero-padded weights
    b*_ref  : (1, 128) f32          zero-padded biases
    loss_ref: (1, 1) f32 SMEM scalar output
    """
    batch = y_ref.shape[0]
    n = 2 * batch

    def branch(x, w_refs, b_refs):
        # Layer 1: raw (small) contraction dim, f32 operands — avoids an input
        # cast and keeps the unaligned-K matmul on the simplest path.
        h = jnp.dot(x, w_refs[0][...],
                    preferred_element_type=jnp.float32) + b_refs[0][...]
        h = jnp.maximum(h, 0.0)
        # Layers 2..5: full 128x128 bf16 MXU tiles with f32 accumulation;
        # bias-add / ReLU stay f32 on the VPU (v5e has no bf16 VPU/EUP).
        for li in range(1, 5):
            h = jnp.dot(h.astype(jnp.bfloat16), w_refs[li][...],
                        preferred_element_type=jnp.float32) + b_refs[li][...]
            if li in (1, 3):          # ReLU after encoder L2 and projection L1
                h = jnp.maximum(h, 0.0)
        return h

    h_a = branch(x1_ref[...],
                 (w1a_ref, w2a_ref, w3a_ref, w4a_ref, w5a_ref),
                 (b1a_ref, b2a_ref, b3a_ref, b4a_ref, b5a_ref))
    h_b = branch(x2_ref[...],
                 (w1b_ref, w2b_ref, w3b_ref, w4b_ref, w5b_ref),
                 (b1b_ref, b2b_ref, b3b_ref, b4b_ref, b5b_ref))

    # Projected embeddings stay in vregs — no VMEM scratch round-trip.
    f = jnp.concatenate([h_a, h_b], axis=0)                      # (2B, 128) f32

    # --- SupConLoss ('all' mode), dense (2B, 2B); f32 similarity for parity.
    fn = f * lax.rsqrt(jnp.sum(f * f, axis=-1, keepdims=True) + 1e-12)
    sim = lax.dot_general(fn, fn, (((1,), (1,)), ((), ())),
                          preferred_element_type=jnp.float32) * (1.0 / TEMPERATURE)

    row = lax.broadcasted_iota(jnp.int32, (n, n), 0)
    col = lax.broadcasted_iota(jnp.int32, (n, n), 1)
    diag = row == col

    logits_max = jnp.max(sim, axis=1, keepdims=True)   # detach(): no-op in fwd
    logits = sim - logits_max
    exp_logits = jnp.where(diag, 0.0, jnp.exp(logits))           # select, not mask-mul
    log_prob = logits - jnp.log(jnp.sum(exp_logits, axis=1, keepdims=True))

    # Positive mask from raw labels: one-hot + MXU self-product avoids any
    # in-kernel transpose/reshape of the (B,1) label column.
    classes = lax.broadcasted_iota(jnp.int32, (batch, NUM_CLASS_PAD), 1)
    oh_b = (y_ref[...] == classes).astype(jnp.float32)           # (B, 128)
    oh = jnp.concatenate([oh_b, oh_b], axis=0)                   # (2B, 128)
    eq = lax.dot_general(oh, oh, (((1,), (1,)), ((), ())),
                         preferred_element_type=jnp.float32)     # (2B, 2B)
    pos = jnp.logical_and(eq > 0.5, jnp.logical_not(diag))

    pos_cnt = jnp.sum(pos.astype(jnp.float32), axis=1, keepdims=True)
    sum_pos = jnp.sum(jnp.where(pos, log_prob, 0.0), axis=1, keepdims=True)
    # Zero-positive anchors contribute 0 (clamped count) instead of NaN.
    mean_log_prob_pos = sum_pos / jnp.maximum(pos_cnt, 1.0)      # exact divide
    per_anchor = -(TEMPERATURE / BASE_TEMPERATURE) * mean_log_prob_pos
    loss_ref[0, 0] = jnp.sum(per_anchor) * (1.0 / n)             # .view(2, B).mean()


# ---------------------------------------------------------------------------
# One-time parameter preparation (outside the per-step path).
# ---------------------------------------------------------------------------
def prepare_params(params):
    """params: list of 5 (w, b); w:(in,out) f32, b:(1,out) f32.
    Pads out dims (and in dims of layers 2..5) to 128 lanes with exact zeros,
    keeps layer-1 weights f32 with the raw input dim, casts layers 2..5 to bf16.
    Zero padding is exact: padded activation columns stay exactly 0 through the
    whole chain and do not perturb the L2 norm or the similarity matrix."""
    out = []
    for i, (w, b) in enumerate(params):
        din, dout = w.shape
        din_p = din if i == 0 else _round_up(din, LANE)
        dout_p = _round_up(dout, LANE)
        wp = jnp.pad(w, ((0, din_p - din), (0, dout_p - dout)))
        wp = wp.astype(jnp.float32 if i == 0 else jnp.bfloat16)
        bp = jnp.pad(b, ((0, 0), (0, dout_p - dout))).astype(jnp.float32)
        out.append((wp, bp))
    return tuple(out)


# ---------------------------------------------------------------------------
# Full forward: loss = SupConLoss(cat([proj1(enc1(x1)), proj2(enc2(x2))]), y.T[0])
# ---------------------------------------------------------------------------
@jax.jit
def supcon_model_forward(x1, x2, y, params_a, params_b):
    batch = x1.shape[0]
    n = 2 * batch

    flat = []
    for w, b in params_a:
        flat += [w, b]
    for w, b in params_b:
        flat += [w, b]
    inputs = [y, x1, x2, *flat]
    n_in = len(inputs)

    # Advisory cost hint for XLA scheduling around the custom call.
    flops = 0
    for w, _ in (*params_a, *params_b):
        flops += 2 * batch * w.shape[0] * w.shape[1]
    emb_p = params_a[-1][0].shape[1]
    flops += 2 * n * n * emb_p             # similarity matmul
    flops += 2 * n * n * NUM_CLASS_PAD     # label-equality matmul
    transcendentals = n * n + 4 * n        # exp + log / rsqrt
    bytes_accessed = 4 + sum(a.size * a.dtype.itemsize for a in inputs)

    loss = pl.pallas_call(
        _fused_supcon_kernel,
        out_shape=jax.ShapeDtypeStruct((1, 1), jnp.float32),
        in_specs=[pl.BlockSpec(memory_space=pltpu.MemorySpace.VMEM)] * n_in,
        out_specs=pl.BlockSpec(memory_space=pltpu.MemorySpace.SMEM),
        cost_estimate=pl.CostEstimate(flops=flops,
                                      transcendentals=transcendentals,
                                      bytes_accessed=bytes_accessed),
        compiler_params=pltpu.CompilerParams(
            # Resident working set is < 1 MiB at this config; explicit budget
            # keeps it valid on v7x (64 MiB VMEM) with large headroom.
            vmem_limit_bytes=16 * 1024 * 1024),
    )(*inputs)
    return loss[0, 0]


# ---------------------------------------------------------------------------
# Deterministic parameter init (PyTorch nn.Linear style uniform bounds).
# ---------------------------------------------------------------------------
def _init_linear(key, fan_in, fan_out):
    kw, kb = jax.random.split(key)
    bound = 1.0 / float(fan_in) ** 0.5
    w = jax.random.uniform(kw, (fan_in, fan_out), jnp.float32, -bound, bound)
    b = jax.random.uniform(kb, (1, fan_out), jnp.float32, -bound, bound)
    return w, b


def _init_branch(key, x_dim, hidden_dim, embed_dim):
    dims = [(x_dim, hidden_dim), (hidden_dim, hidden_dim), (hidden_dim, embed_dim),
            (embed_dim, embed_dim), (embed_dim, embed_dim)]
    keys = jax.random.split(key, len(dims))
    return [_init_linear(k, fi, fo) for k, (fi, fo) in zip(keys, dims)]


if __name__ == "__main__":
    B, X1_DIM, X2_DIM, HIDDEN, EMBED = 8, 16, 24, 32, 32

    key = jax.random.PRNGKey(0)
    k_x1, k_x2, k_y, k_p1, k_p2 = jax.random.split(key, 5)

    x1 = jax.random.normal(k_x1, (B, X1_DIM), jnp.float32)
    x2 = jax.random.normal(k_x2, (B, X2_DIM), jnp.float32)
    y = jax.random.randint(k_y, (B, 1), 0, 4, jnp.int32)          # class labels

    params_a = prepare_params(_init_branch(k_p1, X1_DIM, HIDDEN, EMBED))
    params_b = prepare_params(_init_branch(k_p2, X2_DIM, HIDDEN, EMBED))

    loss = supcon_model_forward(x1, x2, y, params_a, params_b)
    loss = jax.block_until_ready(loss)
    assert loss.shape == () and bool(jnp.isfinite(loss))
    print("KERNEL_OK")
</pallas_src>

<mosaic_0001>
module attributes {stable_mosaic.version = 11 : i64} {
  func.func @_fused_supcon_kernel(%arg0: memref<8x1xi32, #tpu.memory_space<vmem>>, %arg1: memref<8x16xf32, #tpu.memory_space<vmem>>, %arg2: memref<8x24xf32, #tpu.memory_space<vmem>>, %arg3: memref<16x128xf32, #tpu.memory_space<vmem>>, %arg4: memref<1x128xf32, #tpu.memory_space<vmem>>, %arg5: memref<128x128xbf16, #tpu.memory_space<vmem>>, %arg6: memref<1x128xf32, #tpu.memory_space<vmem>>, %arg7: memref<128x128xbf16, #tpu.memory_space<vmem>>, %arg8: memref<1x128xf32, #tpu.memory_space<vmem>>, %arg9: memref<128x128xbf16, #tpu.memory_space<vmem>>, %arg10: memref<1x128xf32, #tpu.memory_space<vmem>>, %arg11: memref<128x128xbf16, #tpu.memory_space<vmem>>, %arg12: memref<1x128xf32, #tpu.memory_space<vmem>>, %arg13: memref<24x128xf32, #tpu.memory_space<vmem>>, %arg14: memref<1x128xf32, #tpu.memory_space<vmem>>, %arg15: memref<128x128xbf16, #tpu.memory_space<vmem>>, %arg16: memref<1x128xf32, #tpu.memory_space<vmem>>, %arg17: memref<128x128xbf16, #tpu.memory_space<vmem>>, %arg18: memref<1x128xf32, #tpu.memory_space<vmem>>, %arg19: memref<128x128xbf16, #tpu.memory_space<vmem>>, %arg20: memref<1x128xf32, #tpu.memory_space<vmem>>, %arg21: memref<128x128xbf16, #tpu.memory_space<vmem>>, %arg22: memref<1x128xf32, #tpu.memory_space<vmem>>, %arg23: memref<1x1xf32, #tpu.memory_space<smem>>) attributes {dimension_semantics = [], scalar_prefetch = 0 : i64, scratch_operands = 0 : i64, tpu.core_type = #tpu.core_type<tc>} {
    %c0 = arith.constant 0 : index
    %c0_0 = arith.constant 0 : index
    %0 = vector.load %arg1[%c0, %c0_0] : memref<8x16xf32, #tpu.memory_space<vmem>>, vector<8x16xf32>
    %c0_1 = arith.constant 0 : index
    %c0_2 = arith.constant 0 : index
    %1 = vector.load %arg3[%c0_1, %c0_2] : memref<16x128xf32, #tpu.memory_space<vmem>>, vector<16x128xf32>
    %cst = arith.constant dense<0.000000e+00> : vector<8x128xf32>
    %2 = tpu.matmul %0, %1, %cst {dimension_numbers = #tpu.dot_dimension_numbers<[1], [0], [0], [1], [0, 0, 1, 1], [], []>} : vector<8x16xf32>, vector<16x128xf32>, vector<8x128xf32> -> vector<8x128xf32>
    %c0_3 = arith.constant 0 : index
    %c0_4 = arith.constant 0 : index
    %3 = vector.load %arg4[%c0_3, %c0_4] : memref<1x128xf32, #tpu.memory_space<vmem>>, vector<1x128xf32>
    %4 = vector.broadcast %3 : vector<1x128xf32> to vector<8x128xf32>
    %5 = arith.addf %2, %4 : vector<8x128xf32>
    %cst_5 = arith.constant 0.000000e+00 : f32
    %6 = vector.broadcast %cst_5 : f32 to vector<8x128xf32>
    %7 = arith.maximumf %5, %6 : vector<8x128xf32>
    %8 = arith.truncf %7 : vector<8x128xf32> to vector<8x128xbf16>
    %c0_6 = arith.constant 0 : index
    %c0_7 = arith.constant 0 : index
    %9 = vector.load %arg5[%c0_6, %c0_7] : memref<128x128xbf16, #tpu.memory_space<vmem>>, vector<128x128xbf16>
    %cst_8 = arith.constant dense<0.000000e+00> : vector<8x128xf32>
    %10 = tpu.matmul %8, %9, %cst_8 {dimension_numbers = #tpu.dot_dimension_numbers<[1], [0], [0], [1], [0, 0, 1, 1], [], []>} : vector<8x128xbf16>, vector<128x128xbf16>, vector<8x128xf32> -> vector<8x128xf32>
    %c0_9 = arith.constant 0 : index
    %c0_10 = arith.constant 0 : index
    %11 = vector.load %arg6[%c0_9, %c0_10] : memref<1x128xf32, #tpu.memory_space<vmem>>, vector<1x128xf32>
    %12 = vector.broadcast %11 : vector<1x128xf32> to vector<8x128xf32>
    %13 = arith.addf %10, %12 : vector<8x128xf32>
    %cst_11 = arith.constant 0.000000e+00 : f32
    %14 = vector.broadcast %cst_11 : f32 to vector<8x128xf32>
    %15 = arith.maximumf %13, %14 : vector<8x128xf32>
    %16 = arith.truncf %15 : vector<8x128xf32> to vector<8x128xbf16>
    %c0_12 = arith.constant 0 : index
    %c0_13 = arith.constant 0 : index
    %17 = vector.load %arg7[%c0_12, %c0_13] : memref<128x128xbf16, #tpu.memory_space<vmem>>, vector<128x128xbf16>
    %cst_14 = arith.constant dense<0.000000e+00> : vector<8x128xf32>
    %18 = tpu.matmul %16, %17, %cst_14 {dimension_numbers = #tpu.dot_dimension_numbers<[1], [0], [0], [1], [0, 0, 1, 1], [], []>} : vector<8x128xbf16>, vector<128x128xbf16>, vector<8x128xf32> -> vector<8x128xf32>
    %c0_15 = arith.constant 0 : index
    %c0_16 = arith.constant 0 : index
    %19 = vector.load %arg8[%c0_15, %c0_16] : memref<1x128xf32, #tpu.memory_space<vmem>>, vector<1x128xf32>
    %20 = vector.broadcast %19 : vector<1x128xf32> to vector<8x128xf32>
    %21 = arith.addf %18, %20 : vector<8x128xf32>
    %22 = arith.truncf %21 : vector<8x128xf32> to vector<8x128xbf16>
    %c0_17 = arith.constant 0 : index
    %c0_18 = arith.constant 0 : index
    %23 = vector.load %arg9[%c0_17, %c0_18] : memref<128x128xbf16, #tpu.memory_space<vmem>>, vector<128x128xbf16>
    %cst_19 = arith.constant dense<0.000000e+00> : vector<8x128xf32>
    %24 = tpu.matmul %22, %23, %cst_19 {dimension_numbers = #tpu.dot_dimension_numbers<[1], [0], [0], [1], [0, 0, 1, 1], [], []>} : vector<8x128xbf16>, vector<128x128xbf16>, vector<8x128xf32> -> vector<8x128xf32>
    %c0_20 = arith.constant 0 : index
    %c0_21 = arith.constant 0 : index
    %25 = vector.load %arg10[%c0_20, %c0_21] : memref<1x128xf32, #tpu.memory_space<vmem>>, vector<1x128xf32>
    %26 = vector.broadcast %25 : vector<1x128xf32> to vector<8x128xf32>
    %27 = arith.addf %24, %26 : vector<8x128xf32>
    %cst_22 = arith.constant 0.000000e+00 : f32
    %28 = vector.broadcast %cst_22 : f32 to vector<8x128xf32>
    %29 = arith.maximumf %27, %28 : vector<8x128xf32>
    %30 = arith.truncf %29 : vector<8x128xf32> to vector<8x128xbf16>
    %c0_23 = arith.constant 0 : index
    %c0_24 = arith.constant 0 : index
    %31 = vector.load %arg11[%c0_23, %c0_24] : memref<128x128xbf16, #tpu.memory_space<vmem>>, vector<128x128xbf16>
    %cst_25 = arith.constant dense<0.000000e+00> : vector<8x128xf32>
    %32 = tpu.matmul %30, %31, %cst_25 {dimension_numbers = #tpu.dot_dimension_numbers<[1], [0], [0], [1], [0, 0, 1, 1], [], []>} : vector<8x128xbf16>, vector<128x128xbf16>, vector<8x128xf32> -> vector<8x128xf32>
    %c0_26 = arith.constant 0 : index
    %c0_27 = arith.constant 0 : index
    %33 = vector.load %arg12[%c0_26, %c0_27] : memref<1x128xf32, #tpu.memory_space<vmem>>, vector<1x128xf32>
    %34 = vector.broadcast %33 : vector<1x128xf32> to vector<8x128xf32>
    %35 = arith.addf %32, %34 : vector<8x128xf32>
    %c0_28 = arith.constant 0 : index
    %c0_29 = arith.constant 0 : index
    %36 = vector.load %arg2[%c0_28, %c0_29] : memref<8x24xf32, #tpu.memory_space<vmem>>, vector<8x24xf32>
    %c0_30 = arith.constant 0 : index
    %c0_31 = arith.constant 0 : index
    %37 = vector.load %arg13[%c0_30, %c0_31] : memref<24x128xf32, #tpu.memory_space<vmem>>, vector<24x128xf32>
    %cst_32 = arith.constant dense<0.000000e+00> : vector<8x128xf32>
    %38 = tpu.matmul %36, %37, %cst_32 {dimension_numbers = #tpu.dot_dimension_numbers<[1], [0], [0], [1], [0, 0, 1, 1], [], []>} : vector<8x24xf32>, vector<24x128xf32>, vector<8x128xf32> -> vector<8x128xf32>
    %c0_33 = arith.constant 0 : index
    %c0_34 = arith.constant 0 : index
    %39 = vector.load %arg14[%c0_33, %c0_34] : memref<1x128xf32, #tpu.memory_space<vmem>>, vector<1x128xf32>
    %40 = vector.broadcast %39 : vector<1x128xf32> to vector<8x128xf32>
    %41 = arith.addf %38, %40 : vector<8x128xf32>
    %cst_35 = arith.constant 0.000000e+00 : f32
    %42 = vector.broadcast %cst_35 : f32 to vector<8x128xf32>
    %43 = arith.maximumf %41, %42 : vector<8x128xf32>
    %44 = arith.truncf %43 : vector<8x128xf32> to vector<8x128xbf16>
    %c0_36 = arith.constant 0 : index
    %c0_37 = arith.constant 0 : index
    %45 = vector.load %arg15[%c0_36, %c0_37] : memref<128x128xbf16, #tpu.memory_space<vmem>>, vector<128x128xbf16>
    %cst_38 = arith.constant dense<0.000000e+00> : vector<8x128xf32>
    %46 = tpu.matmul %44, %45, %cst_38 {dimension_numbers = #tpu.dot_dimension_numbers<[1], [0], [0], [1], [0, 0, 1, 1], [], []>} : vector<8x128xbf16>, vector<128x128xbf16>, vector<8x128xf32> -> vector<8x128xf32>
    %c0_39 = arith.constant 0 : index
    %c0_40 = arith.constant 0 : index
    %47 = vector.load %arg16[%c0_39, %c0_40] : memref<1x128xf32, #tpu.memory_space<vmem>>, vector<1x128xf32>
    %48 = vector.broadcast %47 : vector<1x128xf32> to vector<8x128xf32>
    %49 = arith.addf %46, %48 : vector<8x128xf32>
    %cst_41 = arith.constant 0.000000e+00 : f32
    %50 = vector.broadcast %cst_41 : f32 to vector<8x128xf32>
    %51 = arith.maximumf %49, %50 : vector<8x128xf32>
    %52 = arith.truncf %51 : vector<8x128xf32> to vector<8x128xbf16>
    %c0_42 = arith.constant 0 : index
    %c0_43 = arith.constant 0 : index
    %53 = vector.load %arg17[%c0_42, %c0_43] : memref<128x128xbf16, #tpu.memory_space<vmem>>, vector<128x128xbf16>
    %cst_44 = arith.constant dense<0.000000e+00> : vector<8x128xf32>
    %54 = tpu.matmul %52, %53, %cst_44 {dimension_numbers = #tpu.dot_dimension_numbers<[1], [0], [0], [1], [0, 0, 1, 1], [], []>} : vector<8x128xbf16>, vector<128x128xbf16>, vector<8x128xf32> -> vector<8x128xf32>
    %c0_45 = arith.constant 0 : index
    %c0_46 = arith.constant 0 : index
    %55 = vector.load %arg18[%c0_45, %c0_46] : memref<1x128xf32, #tpu.memory_space<vmem>>, vector<1x128xf32>
    %56 = vector.broadcast %55 : vector<1x128xf32> to vector<8x128xf32>
    %57 = arith.addf %54, %56 : vector<8x128xf32>
    %58 = arith.truncf %57 : vector<8x128xf32> to vector<8x128xbf16>
    %c0_47 = arith.constant 0 : index
    %c0_48 = arith.constant 0 : index
    %59 = vector.load %arg19[%c0_47, %c0_48] : memref<128x128xbf16, #tpu.memory_space<vmem>>, vector<128x128xbf16>
    %cst_49 = arith.constant dense<0.000000e+00> : vector<8x128xf32>
    %60 = tpu.matmul %58, %59, %cst_49 {dimension_numbers = #tpu.dot_dimension_numbers<[1], [0], [0], [1], [0, 0, 1, 1], [], []>} : vector<8x128xbf16>, vector<128x128xbf16>, vector<8x128xf32> -> vector<8x128xf32>
    %c0_50 = arith.constant 0 : index
    %c0_51 = arith.constant 0 : index
    %61 = vector.load %arg20[%c0_50, %c0_51] : memref<1x128xf32, #tpu.memory_space<vmem>>, vector<1x128xf32>
    %62 = vector.broadcast %61 : vector<1x128xf32> to vector<8x128xf32>
    %63 = arith.addf %60, %62 : vector<8x128xf32>
    %cst_52 = arith.constant 0.000000e+00 : f32
    %64 = vector.broadcast %cst_52 : f32 to vector<8x128xf32>
    %65 = arith.maximumf %63, %64 : vector<8x128xf32>
    %66 = arith.truncf %65 : vector<8x128xf32> to vector<8x128xbf16>
    %c0_53 = arith.constant 0 : index
    %c0_54 = arith.constant 0 : index
    %67 = vector.load %arg21[%c0_53, %c0_54] : memref<128x128xbf16, #tpu.memory_space<vmem>>, vector<128x128xbf16>
    %cst_55 = arith.constant dense<0.000000e+00> : vector<8x128xf32>
    %68 = tpu.matmul %66, %67, %cst_55 {dimension_numbers = #tpu.dot_dimension_numbers<[1], [0], [0], [1], [0, 0, 1, 1], [], []>} : vector<8x128xbf16>, vector<128x128xbf16>, vector<8x128xf32> -> vector<8x128xf32>
    %c0_56 = arith.constant 0 : index
    %c0_57 = arith.constant 0 : index
    %69 = vector.load %arg22[%c0_56, %c0_57] : memref<1x128xf32, #tpu.memory_space<vmem>>, vector<1x128xf32>
    %70 = vector.broadcast %69 : vector<1x128xf32> to vector<8x128xf32>
    %71 = arith.addf %68, %70 : vector<8x128xf32>
    %72 = tpu.concatenate %35, %71 in 0 : vector<8x128xf32>, vector<8x128xf32> -> vector<16x128xf32>
    %73 = arith.mulf %72, %72 : vector<16x128xf32>
    %cst_58 = arith.constant dense<0.000000e+00> : vector<16xf32>
    %74 = vector.multi_reduction <add>, %73, %cst_58 [1] : vector<16x128xf32> to vector<16xf32>
    %75 = vector.shape_cast %74 : vector<16xf32> to vector<16x1xf32>
    %cst_59 = arith.constant 9.99999996E-13 : f32
    %76 = vector.broadcast %cst_59 : f32 to vector<16x1xf32>
    %77 = arith.addf %75, %76 : vector<16x1xf32>
    %78 = math.rsqrt %77 : vector<16x1xf32>
    %79 = vector.broadcast %78 : vector<16x1xf32> to vector<16x128xf32>
    %80 = arith.mulf %72, %79 : vector<16x128xf32>
    %cst_60 = arith.constant dense<0.000000e+00> : vector<16x16xf32>
    %81 = tpu.matmul %80, %80, %cst_60 {dimension_numbers = #tpu.dot_dimension_numbers<[1], [1], [0], [0], [0, 0, 1, 0], [], []>} : vector<16x128xf32>, vector<16x128xf32>, vector<16x16xf32> -> vector<16x16xf32>
    %cst_61 = arith.constant 14.2857141 : f32
    %82 = vector.broadcast %cst_61 : f32 to vector<16x16xf32>
    %83 = arith.mulf %81, %82 : vector<16x16xf32>
    %84 = tpu.iota {dimensions = array<i32: 0>} : vector<16x16xi32>
    %85 = tpu.iota {dimensions = array<i32: 1>} : vector<16x16xi32>
    %86 = arith.cmpi eq, %84, %85 : vector<16x16xi32>
    %cst_62 = arith.constant dense<0xFF800000> : vector<16xf32>
    %87 = vector.multi_reduction <maximumf>, %83, %cst_62 [1] : vector<16x16xf32> to vector<16xf32>
    %88 = vector.shape_cast %87 : vector<16xf32> to vector<16x1xf32>
    %89 = vector.broadcast %88 : vector<16x1xf32> to vector<16x16xf32>
    %90 = arith.subf %83, %89 : vector<16x16xf32>
    %91 = math.exp %90 : vector<16x16xf32>
    %cst_63 = arith.constant 0.000000e+00 : f32
    %92 = vector.broadcast %cst_63 : f32 to vector<16x16xf32>
    %93 = arith.select %86, %92, %91 : vector<16x16xi1>, vector<16x16xf32>
    %cst_64 = arith.constant dense<0.000000e+00> : vector<16xf32>
    %94 = vector.multi_reduction <add>, %93, %cst_64 [1] : vector<16x16xf32> to vector<16xf32>
    %95 = vector.shape_cast %94 : vector<16xf32> to vector<16x1xf32>
    %96 = math.log %95 : vector<16x1xf32>
    %97 = vector.broadcast %96 : vector<16x1xf32> to vector<16x16xf32>
    %98 = arith.subf %90, %97 : vector<16x16xf32>
    %99 = tpu.iota {dimensions = array<i32: 1>} : vector<8x128xi32>
    %c0_65 = arith.constant 0 : index
    %c0_66 = arith.constant 0 : index
    %100 = vector.load %arg0[%c0_65, %c0_66] : memref<8x1xi32, #tpu.memory_space<vmem>>, vector<8x1xi32>
    %101 = vector.broadcast %100 : vector<8x1xi32> to vector<8x128xi32>
    %102 = arith.cmpi eq, %101, %99 : vector<8x128xi32>
    %103 = arith.extui %102 : vector<8x128xi1> to vector<8x128xi32>
    %104 = arith.sitofp %103 : vector<8x128xi32> to vector<8x128xf32>
    %105 = tpu.concatenate %104, %104 in 0 : vector<8x128xf32>, vector<8x128xf32> -> vector<16x128xf32>
    %cst_67 = arith.constant dense<0.000000e+00> : vector<16x16xf32>
    %106 = tpu.matmul %105, %105, %cst_67 {dimension_numbers = #tpu.dot_dimension_numbers<[1], [1], [0], [0], [0, 0, 1, 0], [], []>} : vector<16x128xf32>, vector<16x128xf32>, vector<16x16xf32> -> vector<16x16xf32>
    %cst_68 = arith.constant 5.000000e-01 : f32
    %107 = vector.broadcast %cst_68 : f32 to vector<16x16xf32>
    %108 = arith.cmpf ogt, %106, %107 : vector<16x16xf32>
    %cst_69 = arith.constant dense<true> : vector<16x16xi1>
    %109 = arith.xori %86, %cst_69 : vector<16x16xi1>
    %110 = arith.andi %108, %109 : vector<16x16xi1>
    %111 = arith.extui %110 : vector<16x16xi1> to vector<16x16xi32>
    %112 = arith.sitofp %111 : vector<16x16xi32> to vector<16x16xf32>
    %cst_70 = arith.constant dense<0.000000e+00> : vector<16xf32>
    %113 = vector.multi_reduction <add>, %112, %cst_70 [1] : vector<16x16xf32> to vector<16xf32>
    %114 = vector.shape_cast %113 : vector<16xf32> to vector<16x1xf32>
    %cst_71 = arith.constant 0.000000e+00 : f32
    %115 = vector.broadcast %cst_71 : f32 to vector<16x16xf32>
    %116 = arith.select %110, %98, %115 : vector<16x16xi1>, vector<16x16xf32>
    %cst_72 = arith.constant dense<0.000000e+00> : vector<16xf32>
    %117 = vector.multi_reduction <add>, %116, %cst_72 [1] : vector<16x16xf32> to vector<16xf32>
    %118 = vector.shape_cast %117 : vector<16xf32> to vector<16x1xf32>
    %cst_73 = arith.constant 1.000000e+00 : f32
    %119 = vector.broadcast %cst_73 : f32 to vector<16x1xf32>
    %120 = arith.maximumf %114, %119 : vector<16x1xf32>
    %121 = arith.divf %118, %120 : vector<16x1xf32>
    %cst_74 = arith.constant -1.000000e+00 : f32
    %122 = vector.broadcast %cst_74 : f32 to vector<16x1xf32>
    %123 = arith.mulf %122, %121 : vector<16x1xf32>
    %124 = vector.shape_cast %123 : vector<16x1xf32> to vector<1x16x1xf32>
    %cst_75 = arith.constant dense<0.000000e+00> : vector<1xf32>
    %125 = vector.multi_reduction <add>, %124, %cst_75 [1, 2] : vector<1x16x1xf32> to vector<1xf32>
    %126 = vector.shape_cast %125 : vector<1xf32> to vector<1x1x1xf32>
    %127 = vector.extract %126[0, 0, 0] : f32 from vector<1x1x1xf32>
    %cst_76 = arith.constant 6.250000e-02 : f32
    %128 = arith.mulf %127, %cst_76 : f32
    %c0_77 = arith.constant 0 : index
    %c0_78 = arith.constant 0 : index
    %129 = memref.load %arg23[%c0_77, %c0_78] : memref<1x1xf32, #tpu.memory_space<smem>>
    memref.store %128, %arg23[%c0_77, %c0_78] : memref<1x1xf32, #tpu.memory_space<smem>>
    return
  }
}

</mosaic_0001>

<bundles_post_ra>
// kernel: supcon_model_forward.1
= control target key start
LH: loop header
LB: loop body
LE: loop exit
PB: predicated region body
PF: predicated region fallthrough
CT: control target
= control target key end

     0   :  { %s3046_s0 = inlined_call_operand.vmem [shape: s32[8,1], index: 0, kind: input, shape index: {}]   ;;  %s3047_s1 = inlined_call_operand.hbm [shape: f32[8,16], index: 1, kind: input, shape index: {}]   ;;  %s3048_s2 = inlined_call_operand.hbm [shape: f32[8,24], index: 2, kind: input, shape index: {}]   ;;  %s3049_s3 = inlined_call_operand.hbm [shape: f32[16,128], index: 3, kind: input, shape index: {}]   ;;  %s3050_s4 = inlined_call_operand.vmem [shape: f32[1,128], index: 4, kind: input, shape index: {}]   ;;  %s3051_s5 = inlined_call_operand.hbm [shape: bf16[128,128], index: 5, kind: input, shape index: {}]   ;;  %s3052_s6 = inlined_call_operand.hbm [shape: f32[1,128], index: 6, kind: input, shape index: {}]   ;;  %s3053_s7 = inlined_call_operand.hbm [shape: bf16[128,128], index: 7, kind: input, shape index: {}]   ;;  %s3054_s8 = inlined_call_operand.hbm [shape: f32[1,128], index: 8, kind: input, shape index: {}]   ;;  %s3055_s9 = inlined_call_operand.hbm [shape: bf16[128,128], index: 9, kind: input, shape index: {}]   ;;  %s3056_s10 = inlined_call_operand.hbm [shape: f32[1,128], index: 10, kind: input, shape index: {}]   ;;  %s3057_s11 = inlined_call_operand.hbm [shape: bf16[128,128], index: 11, kind: input, shape index: {}]   ;;  %s3058_s12 = inlined_call_operand.hbm [shape: f32[1,128], index: 12, kind: input, shape index: {}]   ;;  %s3059_s13 = inlined_call_operand.hbm [shape: f32[24,128], index: 13, kind: input, shape index: {}]   ;;  %s3060_s14 = inlined_call_operand.hbm [shape: f32[1,128], index: 14, kind: input, shape index: {}]   ;;  %s3061_s15 = inlined_call_operand.vmem [shape: bf16[128,128], index: 15, kind: input, shape index: {}]   ;;  %s3062_s16 = inlined_call_operand.vmem [shape: f32[1,128], index: 16, kind: input, shape index: {}]   ;;  %s3063_s17 = inlined_call_operand.hbm [shape: bf16[128,128], index: 17, kind: input, shape index: {}]   ;;  %s3064_s18 = inlined_call_operand.vmem [shape: f32[1,128], index: 18, kind: input, shape index: {}]   ;;  %s3065_s19 = inlined_call_operand.hbm [shape: bf16[128,128], index: 19, kind: input, shape index: {}]   ;;  %s3066_s20 = inlined_call_operand.vmem [shape: f32[1,128], index: 20, kind: input, shape index: {}]   ;;  %s3067_s21 = inlined_call_operand.hbm [shape: bf16[128,128], index: 21, kind: input, shape index: {}]   ;;  %s3068_s22 = inlined_call_operand.vmem [shape: f32[1,128], index: 22, kind: input, shape index: {}]   ;;  %s3069_s23 = inlined_call_operand.hbm [shape: f32[1,1], index: 23, kind: output, shape index: {}]  }
   0x1   :  { %3077 = sst [smem:[#allocation39_spill]] %s3046_s0 }
   0x2   :  { %3078 = sst [smem:[#allocation40_spill]] %s3047_s1 }
   0x3   :  { %3079 = sst [smem:[#allocation41_spill]] %s3048_s2 }
   0x4   :  { %3080 = sst [smem:[#allocation42_spill]] %s3049_s3 }
   0x5   :  { %3081 = sst [smem:[#allocation43_spill]] %s3050_s4 }
   0x6   :  { %3082 = sst [smem:[#allocation44_spill]] %s3051_s5 }
   0x7   :  { %3083 = sst [smem:[#allocation45_spill]] %s3052_s6 }
   0x8   :  { %3084 = sst [smem:[#allocation46_spill]] %s3053_s7 }
   0x9   :  { %3085 = sst [smem:[#allocation47_spill]] %s3066_s20 }
   0xa   :  { %3086 = sst [smem:[#allocation48_spill]] %s3068_s22 }
   0xb   :  { %3087 = sst [smem:[#allocation49_spill]] %s3069_s23 }
   0xc   :  { %28 = vsyncpa [#allocation3], 0 }
   0xd   :  { %29 = vsyncpa [#allocation6], 0 }
   0xe   :  { %30 = vsyncpa [#allocation9], 0 }
   0xf   :  { %31 = vsyncpa [#allocation12], 0 }
  0x10   :  { %32 = vsyncpa [#allocation15], 0 }
  0x11   :  { %33 = vsyncpa [#allocation18], 0 }
  0x12   :  { %34 = vsyncpa [#allocation21], 0 }
  0x13   :  { %35 = vsyncpa [#allocation24], 0 }
  0x14   :  { %36 = vsyncpa [#allocation27], 0 }
  0x15   :  { %37 = vsyncpa [#allocation4], 0  ;;  %s2492_s4 = smov [#allocation5]   ;;  %s2493_s24 = smov [#allocation8]  }
  0x16   :  { %s56_s30 = sshll.u32 %s2492_s4, 4  ;;  %s79_s25 = sshll.u32 %s2493_s24, 4  ;;  %s57_s30 = int_to_ptr.vmem [resolvable:$true] %s56_s30  ;;  %s2640_s25 = int_to_ptr.vmem [resolvable:$true] %s79_s25 }
  0x17   :  { %s3088_s26 = sld [smem:[#allocation41_spill]] }
  0x1d   :  { %s2110_s2 = scalar_lea.hbm %s3088_s26, 128 }
  0x1e   :  { %p2111_p0 = scmp.ne.s32.totalorder %s3088_s26, %s2110_s2  ;;  %p2114_p1 = scmp.lt.u32.totalorder %s2110_s2, %s3088_s26 }
  0x20   :  { %p2116_p2 = pnand %p2114_p1, %p2111_p0 }
  0x22   :  { %2119 = shalt.err (!%p2116_p2)
}
  0x23   :  { %s2120_s29 = scalar_lea.vmem %s57_s30, 128  ;;  %p2125_p4 = scmp.lt.s32.totalorder %s57_s30, %s57_s30 }
  0x24   :  { %p2121_p3 = scmp.ne.s32.totalorder %s57_s30, %s2120_s29  ;;  %p2126_p5 = scmp.lt.s32.totalorder %s2120_s29, %s2120_s29 }
  0x26   :  { %p2127_p6 = por %p2126_p5, %p2125_p4 }
  0x28   :  { %p2128_p7 = pnand %p2127_p6, %p2121_p3 }
  0x2a   :  { %2131 = shalt.err (!%p2128_p7)
}
  0x2b   :  { %59 = dma.hbm_to_vmem [thread:$0]  %s3088_s26, 128, %s57_s30, [#allocation6]  }
  0x2c   :  { %s3089_s5 = sld [smem:[#allocation44_spill]] }
  0x32   :  { %s2132_s1 = scalar_lea.hbm %s3089_s5, 1024 }
  0x33   :  { %p2133_p8 = scmp.ne.s32.totalorder %s3089_s5, %s2132_s1  ;;  %p2136_p9 = scmp.lt.u32.totalorder %s2132_s1, %s3089_s5 }
  0x35   :  { %p2138_p10 = pnand %p2136_p9, %p2133_p8 }
  0x37   :  { %2141 = shalt.err (!%p2138_p10)
}
  0x38   :  { %s2142_s28 = scalar_lea.vmem %s2640_s25, 1024  ;;  %p2147_p12 = scmp.lt.s32.totalorder %s2640_s25, %s2640_s25 }
  0x39   :  { %p2143_p11 = scmp.ne.s32.totalorder %s2640_s25, %s2142_s28  ;;  %p2148_p13 = scmp.lt.s32.totalorder %s2142_s28, %s2142_s28 }
  0x3b   :  { %p2149_p0 = por %p2148_p13, %p2147_p12 }
  0x3d   :  { %p2150_p1 = pnand %p2149_p0, %p2143_p11 }
  0x3f   :  { %2153 = shalt.err (!%p2150_p1)
}
  0x40   :  { %s2494_s30 = smov 64   ;;  %s2495_s26 = smov 4  }
  0x41   :  { %85 = dma.hbm_to_vmem [thread:$0]  %s3089_s5, 1024, %s2640_s25, [#allocation9], %s2494_s30, %s2494_s30, %s2495_s26  }
  0x42   :  { %s2496_s0 = smov [#allocation11]   ;;  %s2497_s24 = smov [#allocation14]  }
  0x43   :  { %s101_s4 = sshll.u32 %s2496_s0, 4  ;;  %s123_s1 = sshll.u32 %s2497_s24, 4  ;;  %s102_s4 = int_to_ptr.vmem [resolvable:$true] %s101_s4  ;;  %s2674_s1 = int_to_ptr.vmem [resolvable:$true] %s123_s1 }
  0x44   :  { %s3090_s2 = sld [smem:[#allocation46_spill]] }
  0x4a   :  { %s2154_s7 = scalar_lea.hbm %s3090_s2, 1024 }
  0x4b   :  { %p2155_p2 = scmp.ne.s32.totalorder %s3090_s2, %s2154_s7  ;;  %p2158_p3 = scmp.lt.u32.totalorder %s2154_s7, %s3090_s2 }
  0x4d   :  { %p2160_p4 = pnand %p2158_p3, %p2155_p2 }
  0x4f   :  { %2163 = shalt.err (!%p2160_p4)
}
  0x50   :  { %s2164_s25 = scalar_lea.vmem %s102_s4, 1024  ;;  %p2169_p6 = scmp.lt.s32.totalorder %s102_s4, %s102_s4 }
  0x51   :  { %p2165_p5 = scmp.ne.s32.totalorder %s102_s4, %s2164_s25  ;;  %p2170_p7 = scmp.lt.s32.totalorder %s2164_s25, %s2164_s25 }
  0x53   :  { %p2171_p8 = por %p2170_p7, %p2169_p6 }
  0x55   :  { %p2172_p9 = pnand %p2171_p8, %p2165_p5 }
  0x57   :  { %2175 = shalt.err (!%p2172_p9)
}
  0x58   :  { %107 = dma.hbm_to_vmem [thread:$0]  %s3090_s2, 1024, %s102_s4, [#allocation12], %s2494_s30, %s2494_s30, %s2495_s26  }
  0x59   :  { %s2176_s20 = scalar_lea.hbm %s3055_s9, 1024 }
  0x5a   :  { %p2177_p10 = scmp.ne.s32.totalorder %s3055_s9, %s2176_s20  ;;  %p2180_p11 = scmp.lt.u32.totalorder %s2176_s20, %s3055_s9 }
  0x5c   :  { %p2182_p12 = pnand %p2180_p11, %p2177_p10 }
  0x5e   :  { %2185 = shalt.err (!%p2182_p12)
}
  0x5f   :  { %s2186_s27 = scalar_lea.vmem %s2674_s1, 1024  ;;  %p2191_p0 = scmp.lt.s32.totalorder %s2674_s1, %s2674_s1 }
  0x60   :  { %p2187_p13 = scmp.ne.s32.totalorder %s2674_s1, %s2186_s27  ;;  %p2192_p1 = scmp.lt.s32.totalorder %s2186_s27, %s2186_s27 }
  0x62   :  { %p2193_p2 = por %p2192_p1, %p2191_p0 }
  0x64   :  { %p2194_p3 = pnand %p2193_p2, %p2187_p13 }
  0x66   :  { %2197 = shalt.err (!%p2194_p3)
}
  0x67   :  { %129 = dma.hbm_to_vmem [thread:$0]  %s3055_s9, 1024, %s2674_s1, [#allocation15], %s2494_s30, %s2494_s30, %s2495_s26  }
  0x68   :  { %s2498_s7 = smov [#allocation17]   ;;  %s2198_s29 = scalar_lea.hbm %s3057_s11, 1024 }
  0x69   :  { %s145_s28 = sshll.u32 %s2498_s7, 4  ;;  %p2199_p4 = scmp.ne.s32.totalorder %s3057_s11, %s2198_s29  ;;  %s146_s28 = int_to_ptr.vmem [resolvable:$true] %s145_s28 }
  0x6a   :  { %p2202_p5 = scmp.lt.u32.totalorder %s2198_s29, %s3057_s11 }
  0x6c   :  { %p2204_p6 = pnand %p2202_p5, %p2199_p4 }
  0x6e   :  { %2207 = shalt.err (!%p2204_p6)
}
  0x6f   :  { %s2208_s0 = scalar_lea.vmem %s146_s28, 1024  ;;  %p2213_p8 = scmp.lt.s32.totalorder %s146_s28, %s146_s28 }
  0x70   :  { %p2209_p7 = scmp.ne.s32.totalorder %s146_s28, %s2208_s0  ;;  %p2214_p9 = scmp.lt.s32.totalorder %s2208_s0, %s2208_s0 }
  0x72   :  { %p2215_p10 = por %p2214_p9, %p2213_p8 }
  0x74   :  { %p2216_p11 = pnand %p2215_p10, %p2209_p7 }
  0x76   :  { %2219 = shalt.err (!%p2216_p11)
}
  0x77   :  { %151 = dma.hbm_to_vmem [thread:$0]  %s3057_s11, 1024, %s146_s28, [#allocation18], %s2494_s30, %s2494_s30, %s2495_s26  }
  0x78   :  { %s2499_s24 = smov [#allocation20]   ;;  %s2500_s27 = smov [#allocation23]  }
  0x79   :  { %s167_s6 = sshll.u32 %s2499_s24, 4  ;;  %s193_s4 = sshll.u32 %s2500_s27, 4  ;;  %s168_s6 = int_to_ptr.vmem [resolvable:$true] %s167_s6  ;;  %s194_s4 = int_to_ptr.vmem [resolvable:$true] %s193_s4 }
  0x7a   :  { %s2220_s25 = scalar_lea.hbm %s3059_s13, 384 }
  0x7b   :  { %p2221_p12 = scmp.ne.s32.totalorder %s3059_s13, %s2220_s25  ;;  %p2224_p13 = scmp.lt.u32.totalorder %s2220_s25, %s3059_s13 }
  0x7d   :  { %p2226_p0 = pnand %p2224_p13, %p2221_p12 }
  0x7f   :  { %2229 = shalt.err (!%p2226_p0)
}
  0x80   :  { %s2230_s11 = scalar_lea.vmem %s168_s6, 384  ;;  %p2235_p2 = scmp.lt.s32.totalorder %s168_s6, %s168_s6 }
  0x81   :  { %p2231_p1 = scmp.ne.s32.totalorder %s168_s6, %s2230_s11  ;;  %p2236_p3 = scmp.lt.s32.totalorder %s2230_s11, %s2230_s11 }
  0x83   :  { %p2237_p4 = por %p2236_p3, %p2235_p2 }
  0x85   :  { %p2238_p5 = pnand %p2237_p4, %p2231_p1 }
  0x87   :  { %2241 = shalt.err (!%p2238_p5)
}
  0x88   :  { %s2501_s28 = smov 128   ;;  %s2502_s20 = smov 8  }
  0x89   :  { %173 = dma.hbm_to_vmem [thread:$0]  %s3059_s13, 384, %s168_s6, [#allocation21], %s2501_s28, %s2501_s28, %s2502_s20  }
  0x8a   :  { %s2242_s24 = scalar_lea.hbm %s3063_s17, 1024 }
  0x8b   :  { %p2243_p6 = scmp.ne.s32.totalorder %s3063_s17, %s2242_s24  ;;  %p2246_p7 = scmp.lt.u32.totalorder %s2242_s24, %s3063_s17 }
  0x8d   :  { %p2248_p8 = pnand %p2246_p7, %p2243_p6 }
  0x8f   :  { %2251 = shalt.err (!%p2248_p8)
}
  0x90   :  { %s2252_s5 = scalar_lea.vmem %s194_s4, 1024  ;;  %p2257_p10 = scmp.lt.s32.totalorder %s194_s4, %s194_s4 }
  0x91   :  { %p2253_p9 = scmp.ne.s32.totalorder %s194_s4, %s2252_s5  ;;  %p2258_p11 = scmp.lt.s32.totalorder %s2252_s5, %s2252_s5 }
  0x93   :  { %p2259_p12 = por %p2258_p11, %p2257_p10 }
  0x95   :  { %p2260_p13 = pnand %p2259_p12, %p2253_p9 }
  0x97   :  { %2263 = shalt.err (!%p2260_p13)
}
  0x98   :  { %199 = dma.hbm_to_vmem [thread:$0]  %s3063_s17, 1024, %s194_s4, [#allocation24], %s2494_s30, %s2494_s30, %s2495_s26  }
  0x99   :  { %s2503_s29 = smov [#allocation2]   ;;  %s2504_s3 = smov [#allocation7]  }
  0x9a   :  { %s46_s23 = sshll.u32 %s2503_s29, 4  ;;  %s65_s11 = sshll.u32 %s2504_s3, 4  ;;  %s47_s23 = int_to_ptr.vmem [resolvable:$true] %s46_s23  ;;  %s66_s11 = int_to_ptr.vmem [resolvable:$true] %s65_s11 }
  0x9b   :  { %s3091_s9 = sld [smem:[#allocation40_spill]] }
  0xa1   :  { %s2264_s1 = scalar_lea.hbm %s3091_s9, 128 }
  0xa2   :  { %p2265_p0 = scmp.ne.s32.totalorder %s3091_s9, %s2264_s1  ;;  %p2268_p1 = scmp.lt.u32.totalorder %s2264_s1, %s3091_s9 }
  0xa4   :  { %p2270_p2 = pnand %p2268_p1, %p2265_p0 }
  0xa6   :  { %2273 = shalt.err (!%p2270_p2)
}
  0xa7   :  { %s2274_s17 = scalar_lea.vmem %s47_s23, 128  ;;  %p2279_p4 = scmp.lt.s32.totalorder %s47_s23, %s47_s23 }
  0xa8   :  { %p2275_p3 = scmp.ne.s32.totalorder %s47_s23, %s2274_s17  ;;  %p2280_p5 = scmp.lt.s32.totalorder %s2274_s17, %s2274_s17 }
  0xaa   :  { %p2281_p6 = por %p2280_p5, %p2279_p4 }
  0xac   :  { %p2282_p7 = pnand %p2281_p6, %p2275_p3 }
  0xae   :  { %2285 = shalt.err (!%p2282_p7)
}
  0xaf   :  { %49 = dma.hbm_to_vmem [thread:$0]  %s3091_s9, 128, %s47_s23, [#allocation3]  }
  0xb0   :  { %s3092_s6 = sld [smem:[#allocation42_spill]] }
  0xb6   :  { %s2286_s29 = scalar_lea.hbm %s3092_s6, 256 }
  0xb7   :  { %p2287_p8 = scmp.ne.s32.totalorder %s3092_s6, %s2286_s29  ;;  %p2290_p9 = scmp.lt.u32.totalorder %s2286_s29, %s3092_s6 }
  0xb9   :  { %p2292_p10 = pnand %p2290_p9, %p2287_p8 }
  0xbb   :  { %2295 = shalt.err (!%p2292_p10)
}
  0xbc   :  { %s2296_s24 = scalar_lea.vmem %s66_s11, 256  ;;  %p2301_p12 = scmp.lt.s32.totalorder %s66_s11, %s66_s11 }
  0xbd   :  { %p2297_p11 = scmp.ne.s32.totalorder %s66_s11, %s2296_s24  ;;  %p2302_p13 = scmp.lt.s32.totalorder %s2296_s24, %s2296_s24 }
  0xbf   :  { %p2303_p0 = por %p2302_p13, %p2301_p12 }
  0xc1   :  { %p2304_p1 = pnand %p2303_p0, %p2297_p11 }
  0xc3   :  { %2307 = shalt.err (!%p2304_p1)
}
  0xc4   :  { %71 = dma.hbm_to_vmem [thread:$0]  %s3092_s6, 256, %s66_s11, [#allocation6], %s2501_s28, %s2501_s28, %s2502_s20  }
  0xc5   :  { %s2505_s27 = smov [#allocation10]   ;;  %s2506_s7 = smov [#allocation13]  }
  0xc6   :  { %s92_s2 = sshll.u32 %s2505_s27, 4  ;;  %s114_s17 = sshll.u32 %s2506_s7, 4  ;;  %s93_s2 = int_to_ptr.vmem [resolvable:$true] %s92_s2  ;;  %s115_s17 = int_to_ptr.vmem [resolvable:$true] %s114_s17 }
  0xc7   :  { %s3093_s5 = sld [smem:[#allocation45_spill]] }
  0xcd   :  { %s2308_s13 = scalar_lea.hbm %s3093_s5, 16 }
  0xce   :  { %p2309_p2 = scmp.ne.s32.totalorder %s3093_s5, %s2308_s13  ;;  %p2312_p3 = scmp.lt.u32.totalorder %s2308_s13, %s3093_s5 }
  0xd0   :  { %p2314_p4 = pnand %p2312_p3, %p2309_p2 }
  0xd2   :  { %2317 = shalt.err (!%p2314_p4)
}
  0xd3   :  { %s2318_s28 = scalar_lea.vmem %s93_s2, 16  ;;  %s2322_s20 = scalar_lea.vmem %s93_s2, 32 }
  0xd4   :  { %p2319_p5 = scmp.ne.s32.totalorder %s93_s2, %s2318_s28  ;;  %p2323_p6 = scmp.lt.s32.totalorder %s93_s2, %s93_s2 }
  0xd5   :  { %p2324_p7 = scmp.lt.s32.totalorder %s2322_s20, %s2318_s28 }
  0xd7   :  { %p2325_p8 = por %p2324_p7, %p2323_p6 }
  0xd9   :  { %p2326_p9 = pnand %p2325_p8, %p2319_p5 }
  0xdb   :  { %2329 = shalt.err (!%p2326_p9)
}
  0xdc   :  { %95 = dma.hbm_to_vmem [thread:$0]  %s3093_s5, 16, %s93_s2, [#allocation9]  }
  0xdd   :  { %s2330_s23 = scalar_lea.hbm %s3054_s8, 16 }
  0xde   :  { %p2331_p10 = scmp.ne.s32.totalorder %s3054_s8, %s2330_s23  ;;  %p2334_p11 = scmp.lt.u32.totalorder %s2330_s23, %s3054_s8 }
  0xe0   :  { %p2336_p12 = pnand %p2334_p11, %p2331_p10 }
  0xe2   :  { %2339 = shalt.err (!%p2336_p12)
}
  0xe3   :  { %s2340_s25 = scalar_lea.vmem %s115_s17, 16  ;;  %s2344_s13 = scalar_lea.vmem %s115_s17, 32 }
  0xe4   :  { %p2341_p13 = scmp.ne.s32.totalorder %s115_s17, %s2340_s25  ;;  %p2345_p0 = scmp.lt.s32.totalorder %s115_s17, %s115_s17 }
  0xe5   :  { %p2346_p1 = scmp.lt.s32.totalorder %s2344_s13, %s2340_s25 }
  0xe7   :  { %p2347_p2 = por %p2346_p1, %p2345_p0 }
  0xe9   :  { %p2348_p3 = pnand %p2347_p2, %p2341_p13 }
  0xeb   :  { %2351 = shalt.err (!%p2348_p3)
}
  0xec   :  { %117 = dma.hbm_to_vmem [thread:$0]  %s3054_s8, 16, %s115_s17, [#allocation12]  }
  0xed   :  { %s2507_s29 = smov [#allocation16]   ;;  %s2508_s22 = smov [#allocation19]  }
  0xee   :  { %s136_s3 = sshll.u32 %s2507_s29, 4  ;;  %s158_s0 = sshll.u32 %s2508_s22, 4  ;;  %s137_s3 = int_to_ptr.vmem [resolvable:$true] %s136_s3  ;;  %s159_s0 = int_to_ptr.vmem [resolvable:$true] %s158_s0 }
  0xef   :  { %s2352_s11 = scalar_lea.hbm %s3056_s10, 16 }
  0xf0   :  { %p2353_p4 = scmp.ne.s32.totalorder %s3056_s10, %s2352_s11  ;;  %p2356_p5 = scmp.lt.u32.totalorder %s2352_s11, %s3056_s10 }
  0xf2   :  { %p2358_p6 = pnand %p2356_p5, %p2353_p4 }
  0xf4   :  { %2361 = shalt.err (!%p2358_p6)
}
  0xf5   :  { %s2362_s8 = scalar_lea.vmem %s137_s3, 16  ;;  %s2366_s17 = scalar_lea.vmem %s137_s3, 32 }
  0xf6   :  { %p2363_p7 = scmp.ne.s32.totalorder %s137_s3, %s2362_s8  ;;  %p2367_p8 = scmp.lt.s32.totalorder %s137_s3, %s137_s3 }
  0xf7   :  { %p2368_p9 = scmp.lt.s32.totalorder %s2366_s17, %s2362_s8 }
  0xf9   :  { %p2369_p10 = por %p2368_p9, %p2367_p8 }
  0xfb   :  { %p2370_p11 = pnand %p2369_p10, %p2363_p7 }
  0xfd   :  { %2373 = shalt.err (!%p2370_p11)
}
  0xfe   :  { %139 = dma.hbm_to_vmem [thread:$0]  %s3056_s10, 16, %s137_s3, [#allocation15]  }
  0xff   :  { %s2374_s25 = scalar_lea.hbm %s3058_s12, 16 }
 0x100   :  { %p2375_p12 = scmp.ne.s32.totalorder %s3058_s12, %s2374_s25  ;;  %p2378_p13 = scmp.lt.u32.totalorder %s2374_s25, %s3058_s12 }
 0x102   :  { %p2380_p0 = pnand %p2378_p13, %p2375_p12 }
 0x104   :  { %2383 = shalt.err (!%p2380_p0)
}
 0x105   :  { %s2384_s22 = scalar_lea.vmem %s159_s0, 16  ;;  %s2388_s28 = scalar_lea.vmem %s159_s0, 32 }
 0x106   :  { %p2385_p1 = scmp.ne.s32.totalorder %s159_s0, %s2384_s22  ;;  %p2389_p2 = scmp.lt.s32.totalorder %s159_s0, %s159_s0 }
 0x107   :  { %p2390_p3 = scmp.lt.s32.totalorder %s2388_s28, %s2384_s22 }
 0x109   :  { %p2391_p4 = por %p2390_p3, %p2389_p2 }
 0x10b   :  { %p2392_p5 = pnand %p2391_p4, %p2385_p1 }
 0x10d   :  { %2395 = shalt.err (!%p2392_p5)
}
 0x10e   :  { %161 = dma.hbm_to_vmem [thread:$0]  %s3058_s12, 16, %s159_s0, [#allocation18]  }
 0x10f   :  { %s2509_s20 = smov [#allocation22]   ;;  %s2510_s6 = smov [#allocation25]  }
 0x110   :  { %s180_s11 = sshll.u32 %s2509_s20, 4  ;;  %s207_s1 = sshll.u32 %s2510_s6, 4  ;;  %s181_s11 = int_to_ptr.vmem [resolvable:$true] %s180_s11  ;;  %s208_s1 = int_to_ptr.vmem [resolvable:$true] %s207_s1 }
 0x111   :  { %s2396_s8 = scalar_lea.hbm %s3060_s14, 16 }
 0x112   :  { %p2397_p6 = scmp.ne.s32.totalorder %s3060_s14, %s2396_s8  ;;  %p2400_p7 = scmp.lt.u32.totalorder %s2396_s8, %s3060_s14 }
 0x114   :  { %p2402_p8 = pnand %p2400_p7, %p2397_p6 }
 0x116   :  { %2405 = shalt.err (!%p2402_p8)
}
 0x117   :  { %s2406_s12 = scalar_lea.vmem %s181_s11, 16  ;;  %s2410_s0 = scalar_lea.vmem %s181_s11, 32 }
 0x118   :  { %p2407_p9 = scmp.ne.s32.totalorder %s181_s11, %s2406_s12  ;;  %p2411_p10 = scmp.lt.s32.totalorder %s181_s11, %s181_s11 }
 0x119   :  { %p2412_p11 = scmp.lt.s32.totalorder %s2410_s0, %s2406_s12 }
 0x11b   :  { %p2413_p12 = por %p2412_p11, %p2411_p10 }
 0x11d   :  { %p2414_p13 = pnand %p2413_p12, %p2407_p9 }
 0x11f   :  { %2417 = shalt.err (!%p2414_p13)
}
 0x120   :  { %183 = dma.hbm_to_vmem [thread:$0]  %s3060_s14, 16, %s181_s11, [#allocation21]  }
 0x121   :  { %s2418_s5 = scalar_lea.hbm %s3065_s19, 1024 }
 0x122   :  { %p2419_p0 = scmp.ne.s32.totalorder %s3065_s19, %s2418_s5  ;;  %p2422_p1 = scmp.lt.u32.totalorder %s2418_s5, %s3065_s19 }
 0x124   :  { %p2424_p2 = pnand %p2422_p1, %p2419_p0 }
 0x126   :  { %2427 = shalt.err (!%p2424_p2)
}
 0x127   :  { %s2428_s3 = scalar_lea.vmem %s208_s1, 1024  ;;  %p2433_p4 = scmp.lt.s32.totalorder %s208_s1, %s208_s1 }
 0x128   :  { %p2429_p3 = scmp.ne.s32.totalorder %s208_s1, %s2428_s3  ;;  %p2434_p5 = scmp.lt.s32.totalorder %s2428_s3, %s2428_s3 }
 0x12a   :  { %p2435_p6 = por %p2434_p5, %p2433_p4 }
 0x12c   :  { %p2436_p7 = pnand %p2435_p6, %p2429_p3 }
 0x12e   :  { %2439 = shalt.err (!%p2436_p7)
}
 0x12f   :  { %213 = dma.hbm_to_vmem [thread:$0]  %s3065_s19, 1024, %s208_s1, [#allocation24], %s2494_s30, %s2494_s30, %s2495_s26  }
 0x130   :  { %s2511_s11 = smov [#allocation26]   ;;  %s2440_s8 = scalar_lea.hbm %s3067_s21, 1024 }
 0x131   :  { %s221_s6 = sshll.u32 %s2511_s11, 4  ;;  %p2441_p8 = scmp.ne.s32.totalorder %s3067_s21, %s2440_s8  ;;  %s222_s6 = int_to_ptr.vmem [resolvable:$true] %s221_s6 }
 0x132   :  { %p2444_p9 = scmp.lt.u32.totalorder %s2440_s8, %s3067_s21 }
 0x134   :  { %p2446_p10 = pnand %p2444_p9, %p2441_p8 }
 0x136   :  { %2449 = shalt.err (!%p2446_p10)
}
 0x137   :  { %s2450_s12 = scalar_lea.vmem %s222_s6, 1024  ;;  %p2455_p12 = scmp.lt.s32.totalorder %s222_s6, %s222_s6 }
 0x138   :  { %p2451_p11 = scmp.ne.s32.totalorder %s222_s6, %s2450_s12  ;;  %p2456_p13 = scmp.lt.s32.totalorder %s2450_s12, %s2450_s12 }
 0x13a   :  { %p2457_p0 = por %p2456_p13, %p2455_p12 }
 0x13c   :  { %p2458_p1 = pnand %p2457_p0, %p2451_p11 }
 0x13e   :  { %2461 = shalt.err (!%p2458_p1)
}
 0x13f   :  { %227 = dma.hbm_to_vmem [thread:$0]  %s3067_s21, 1024, %s222_s6, [#allocation27], %s2494_s30, %s2494_s30, %s2495_s26  }
 0x140   :  { %2472 = dma.done.wait [#allocation3], 128  }
 0x141   :  { %2473 = vsyncadd [#allocation3], 4294967168 }
 0x142   :  { %2474 = dma.done.wait [#allocation6], 384  }
 0x143   :  { %2475 = vsyncadd [#allocation6], 4294966912 }
 0x144   :  { %2476 = dma.done.wait [#allocation9], 1040  }
 0x145   :  { %2477 = vsyncadd [#allocation9], 4294966256 }
 0x146   :  { %2478 = dma.done.wait [#allocation12], 1040  }
 0x147   :  { %2479 = vsyncadd [#allocation12], 4294966256 }
 0x148   :  { %2480 = dma.done.wait [#allocation15], 1040  }
 0x149   :  { %2481 = vsyncadd [#allocation15], 4294966256 }
 0x14a   :  { %2482 = dma.done.wait [#allocation18], 1040  }
 0x14b   :  { %2483 = vsyncadd [#allocation18], 4294966256 }
 0x14c   :  { %2484 = dma.done.wait [#allocation21], 400  }
 0x14d   :  { %2485 = vsyncadd [#allocation21], 4294966896 }
 0x14e   :  { %2486 = dma.done.wait [#allocation24], 2048  }
 0x14f   :  { %2487 = vsyncadd [#allocation24], 4294965248 }
 0x150   :  { %2488 = dma.done.wait [#allocation27], 1024  }
 0x151   :  { %2489 = vsyncadd [#allocation27], 4294966272  ;;  %v2512_v0 = vmov 0.0|0.0   ;;  %vm2513_vm0 = vmmov 0   ;;  %v2514_v1 = vmov 0.0   ;;  %v280_v2 = vld [vmem:[#allocation7] sm:$0xff] }
 0x152   :  { %1984 = vmatprep.subr.bf16.mxu0 %v2512_v0  ;;  %1798 = vmatprep.mubr.msk.f32.mxu0 %vm2513_vm0, %v2514_v1  ;;  %v281_v3 = vld [vmem:[#allocation7 + $0x8] sm:$0xff]  ;;  %v2030_v5 = vld [vmem:[#allocation8] sm:$0xff]   ;;  %vm289_vm1 = vcmask 130048   ;;  %v2031_v7 = vld [vmem:[#allocation8 + $0x8] sm:$0xff]   ;;  %s3094_s26 = sld [smem:[#allocation43_spill]]  ;;  %vm825_vm2 = vcmask 195584  }
 0x153   :  { %1801 = vmatprep.subr.bf16.mxu1 %v2514_v1  ;;  %1817 = vmatprep.mubr.msk.bf16.mxu1 %vm2513_vm0, %v2514_v1  ;;  %v1985_v4 = vpack.c.bf16 %v281_v3, %v280_v2  ;;  %v279_v6 = vld [vmem:[#allocation2] sm:$0xff]  ;;  %v2032_v8 = vld [vmem:[#allocation8 + $0x10] sm:$0xff]   ;;  %v2033_v9 = vld [vmem:[#allocation8 + $0x18] sm:$0xff]   ;;  %s3096_s12 = sld [smem:[#allocation48_spill]]  ;;  %s3097_s21 = sld [smem:[#allocation39_spill]]  ;;  %vm2518_vm7 = vmmov 1  }
 0x154   :  { %1802 = vmatpush3.bf16.msra.mxu1 %v2030_v5  ;;  %v2034_v10 = vld [vmem:[#allocation8 + $0x20] sm:$0xff]   ;;  %v2035_v11 = vld [vmem:[#allocation8 + $0x28] sm:$0xff]   ;;  %v2036_v12 = vld [vmem:[#allocation8 + $0x30] sm:$0xff]   ;;  %vm1586_vm14 = vcmask 7168   ;;  %s3102_s25 = sld [smem:[#allocation49_spill]] }
 0x155   :  { %1986 = vmatpush3.bf16.msra.mxu0 %v1985_v4  ;;  %1803 = vmatprep.subr.bf16.mxu1 %v2514_v1  ;;  %v2037_v13 = vld [vmem:[#allocation8 + $0x38] sm:$0xff]   ;;  %v2038_v14 = vld [vmem:[#allocation11] sm:$0xff]   ;;  %v2039_v15 = vld [vmem:[#allocation11 + $0x8] sm:$0xff]  }
 0x156   :  { %1821 = vmatprep.subr.bf16.mxu0 %v2514_v1  ;;  %v2040_v16 = vld [vmem:[#allocation11 + $0x10] sm:$0xff]   ;;  %v2041_v17 = vld [vmem:[#allocation11 + $0x18] sm:$0xff]   ;;  %v2042_v18 = vld [vmem:[#allocation11 + $0x20] sm:$0xff]  }
 0x157   :  { %v2043_v19 = vld [vmem:[#allocation11 + $0x28] sm:$0xff]   ;;  %v2044_v26 = vld [vmem:[#allocation11 + $0x30] sm:$0xff]   ;;  %v2045_v27 = vld [vmem:[#allocation11 + $0x38] sm:$0xff]  }
 0x158   :  { %1799 = vmatmul.mubr.msk.f32.vlgmr.msra.gmra.mrb[0].mxu0 %vm289_vm1, %v279_v6  ;;  %1804 = vmatpush3.bf16.msra.mxu1 %v2031_v7  ;;  %v1624_v20 = vld [vmem:[%s3094_s26] ss:$0 sm:$0xff]  ;;  %v2046_v28 = vld [vmem:[#allocation14] sm:$0xff]   ;;  %v2047_v29 = vld [vmem:[#allocation14 + $0x8] sm:$0xff]  }
 0x159   :  { %1837 = vmatprep.mubr.msk.bf16.mxu0 %vm2513_vm0, %v2514_v1  ;;  %1805 = vmatprep.subr.bf16.mxu1 %v2514_v1  ;;  %v2048_v30 = vld [vmem:[#allocation14 + $0x10] sm:$0xff]   ;;  %v2049_v31 = vld [vmem:[#allocation14 + $0x18] sm:$0xff]   ;;  %v2050_v32 = vld [vmem:[#allocation14 + $0x20] sm:$0xff]  }
 0x15a   :  { %1822 = vmatpush3.bf16.msra.mxu0 %v2038_v14  ;;  %v2051_v33 = vld [vmem:[#allocation14 + $0x28] sm:$0xff]   ;;  %v2052_v34 = vld [vmem:[#allocation14 + $0x30] sm:$0xff]   ;;  %v1626_v35 = vld [vmem:[#allocation10] ss:$0 sm:$0xff]  ;;  %s2462_s13 = scalar_lea.hbm %s3102_s25, 16 }
 0x15b   :  { %1823 = vmatprep.subr.bf16.mxu0 %v2514_v1  ;;  %v2053_v43 = vld [vmem:[#allocation14 + $0x38] sm:$0xff]   ;;  %v2054_v44 = vld [vmem:[#allocation17] sm:$0xff]   ;;  %v2055_v45 = vld [vmem:[#allocation17 + $0x8] sm:$0xff]   ;;  %p2463_p2 = scmp.ne.s32.totalorder %s3102_s25, %s2462_s13  ;;  %p2466_p3 = scmp.lt.u32.totalorder %s2462_s13, %s3102_s25 }
 0x15c   :  { %1806 = vmatpush3.bf16.msra.mxu1 %v2032_v8  ;;  %v2056_v46 = vld [vmem:[#allocation17 + $0x10] sm:$0xff]   ;;  %v2057_v47 = vld [vmem:[#allocation17 + $0x18] sm:$0xff]   ;;  %v2058_v48 = vld [vmem:[#allocation17 + $0x20] sm:$0xff]  }
 0x15d   :  { %1807 = vmatprep.subr.bf16.mxu1 %v2514_v1  ;;  %v2059_v49 = vld [vmem:[#allocation17 + $0x28] sm:$0xff]   ;;  %v2060_v50 = vld [vmem:[#allocation17 + $0x30] sm:$0xff]   ;;  %v1635_v51 = vld [vmem:[#allocation13] ss:$0 sm:$0xff]  ;;  %p2468_p4 = pnand %p2466_p3, %p2463_p2 }
 0x15e   :  { %1824 = vmatpush3.bf16.msra.mxu0 %v2039_v15  ;;  %v815_v52 = vld [vmem:[#allocation20] sm:$0xff]  ;;  %v816_v53 = vld [vmem:[#allocation20 + $0x8] sm:$0xff]  ;;  %v817_v61 = vld [vmem:[#allocation20 + $0x10] sm:$0xff] }
 0x15f   :  { %1825 = vmatprep.subr.bf16.mxu0 %v2514_v1  ;;  %v1988_v58 = vpack.c.bf16 %v816_v53, %v815_v52  ;;  %v814_v62 = vld [vmem:[#allocation5] sm:$0xff]  ;;  %v2061_v63 = vld [vmem:[#allocation17 + $0x38] sm:$0xff]   ;;  %v2084_v52 = vld [vmem:[#allocation25 + $0x30] sm:$0xff]  }
 0x160   :  { %1808 = vmatpush3.bf16.msra.mxu1 %v2033_v9  ;;  %v2062_v8 = vld [vmem:[%s3061_s15] sm:$0xff]   ;;  %v2065_v14 = vld [vmem:[%s3061_s15 + $0x18] sm:$0xff]  }
 0x161   :  { %1809 = vmatprep.subr.bf16.mxu1 %v2514_v1  ;;  %v2066_v15 = vld [vmem:[%s3061_s15 + $0x20] sm:$0xff]  }
 0x162   :  { %1826 = vmatpush3.bf16.msra.mxu0 %v2040_v16  ;;  %v2067_v16 = vld [vmem:[%s3061_s15 + $0x28] sm:$0xff]   ;;  %v2085_v53 = vld [vmem:[#allocation25 + $0x38] sm:$0xff]  }
 0x163   :  { %1827 = vmatprep.subr.bf16.mxu0 %v2514_v1 }
 0x164   :  { %1810 = vmatpush3.bf16.msra.mxu1 %v2034_v10  ;;  %v2063_v10 = vld [vmem:[%s3061_s15 + $0x8] sm:$0xff]  }
 0x165   :  { %1811 = vmatprep.subr.bf16.mxu1 %v2514_v1 }
 0x166   :  { %1828 = vmatpush3.bf16.msra.mxu0 %v2041_v17  ;;  %v1662_v17 = vld [vmem:[#allocation22] ss:$0 sm:$0xff] }
 0x167   :  { %1829 = vmatprep.subr.bf16.mxu0 %v2514_v1 }
 0x168   :  { %1812 = vmatpush3.bf16.msra.mxu1 %v2035_v11 }
 0x169   :  { %1813 = vmatprep.subr.bf16.mxu1 %v2514_v1 }
 0x16a   :  { %1830 = vmatpush3.bf16.msra.mxu0 %v2042_v18 }
 0x16b   :  { %1831 = vmatprep.subr.bf16.mxu0 %v2514_v1 }
 0x16c   :  { %1814 = vmatpush3.bf16.msra.mxu1 %v2036_v12 }
 0x16d   :  { %1815 = vmatprep.subr.bf16.mxu1 %v2514_v1 }
 0x16e   :  { %1832 = vmatpush3.bf16.msra.mxu0 %v2043_v19  ;;  %v2068_v19 = vld [vmem:[%s3061_s15 + $0x30] sm:$0xff]  }
 0x16f   :  { %1833 = vmatprep.subr.bf16.mxu0 %v2514_v1 }
 0x170   :  { %1816 = vmatpush3.bf16.msra.mxu1 %v2037_v13  ;;  %v2064_v13 = vld [vmem:[%s3061_s15 + $0x10] sm:$0xff]  }
 0x171   :  { %1841 = vmatprep.subr.bf16.mxu1 %v2514_v1 }
 0x172   :  { %1834 = vmatpush3.bf16.msra.mxu0 %v2044_v26  ;;  %v2073_v26 = vld [vmem:[#allocation23 + $0x18] sm:$0xff]  }
 0x173   :  { %1835 = vmatprep.subr.bf16.mxu0 %v2514_v1 }
 0x176   :  { %1836 = vmatpush3.bf16.msra.mxu0 %v2045_v27  ;;  %v2074_v27 = vld [vmem:[#allocation23 + $0x20] sm:$0xff]  }
 0x177   :  { %1861 = vmatprep.subr.bf16.mxu0 %v2514_v1 }
 0x22b   :  { %v359_v21 = vpop.f32.mrb[0].mxu0 }
 0x22c   :  { %v360_v22 = vadd.f32 %v1624_v20, %v359_v21  ;;  %v1800_v23 = vpop.f32.mrb[1].mxu0  ;;  %v2069_v21 = vld [vmem:[%s3061_s15 + $0x38] sm:$0xff]  }
 0x22d   :  { %v2070_v23 = vld [vmem:[#allocation23] sm:$0xff]  }
 0x22e   :  { %v363_v24 = vmax.f32 %v360_v22, 0.0 }
 0x230   :  { %v364_v25 = vpack.c.bf16 %v363_v24, %v363_v24  ;;  %v2071_v24 = vld [vmem:[#allocation23 + $0x8] sm:$0xff]  }
 0x232   :  { %1818 = vmatmul.mubr.bf16.vlgmr.msra.gmra.mrb[0].mxu1 %v364_v25  ;;  %v2072_v25 = vld [vmem:[#allocation23 + $0x10] sm:$0xff]  }
 0x233   :  { %1857 = vmatprep.mubr.msk.bf16.mxu1 %vm2513_vm0, %v2514_v1  ;;  %1842 = vmatpush3.bf16.msra.mxu1 %v2046_v28  ;;  %v2075_v28 = vld [vmem:[#allocation23 + $0x28] sm:$0xff]  }
 0x234   :  { %1843 = vmatprep.subr.bf16.mxu1 %v2514_v1 }
 0x237   :  { %1844 = vmatpush3.bf16.msra.mxu1 %v2047_v29  ;;  %v2076_v29 = vld [vmem:[#allocation23 + $0x30] sm:$0xff]  }
 0x238   :  { %1845 = vmatprep.subr.bf16.mxu1 %v2514_v1 }
 0x23b   :  { %1846 = vmatpush3.bf16.msra.mxu1 %v2048_v30  ;;  %v2077_v30 = vld [vmem:[#allocation23 + $0x38] sm:$0xff]  }
 0x23c   :  { %1847 = vmatprep.subr.bf16.mxu1 %v2514_v1 }
 0x23f   :  { %1848 = vmatpush3.bf16.msra.mxu1 %v2049_v31  ;;  %v1653_v31 = vld [vmem:[#allocation19] ss:$0 sm:$0xff] }
 0x240   :  { %1849 = vmatprep.subr.bf16.mxu1 %v2514_v1 }
 0x243   :  { %1850 = vmatpush3.bf16.msra.mxu1 %v2050_v32 }
 0x244   :  { %1851 = vmatprep.subr.bf16.mxu1 %v2514_v1 }
 0x247   :  { %1852 = vmatpush3.bf16.msra.mxu1 %v2051_v33 }
 0x248   :  { %1853 = vmatprep.subr.bf16.mxu1 %v2514_v1 }
 0x24b   :  { %1854 = vmatpush3.bf16.msra.mxu1 %v2052_v34 }
 0x24c   :  { %1855 = vmatprep.subr.bf16.mxu1 %v2514_v1 }
 0x24f   :  { %1856 = vmatpush3.bf16.msra.mxu1 %v2053_v43 }
 0x250   :  { %1987 = vmatprep.subr.bf16.mxu1 %v2512_v0  ;;  %v1644_v0 = vld [vmem:[#allocation16] ss:$0 sm:$0xff] }
 0x305   :  { %v470_v36 = vpop.f32.mrb[0].mxu1 }
 0x306   :  { %v471_v37 = vadd.f32 %v1626_v35, %v470_v36  ;;  %v1819_v38 = vpop.f32.mrb[1].mxu1 }
 0x307   :  { %v473_v39 = vpop.f32.mrb[2].mxu1  ;;  %v2078_v38 = vld [vmem:[#allocation25] sm:$0xff]  }
 0x308   :  { %v476_v40 = vmax.f32 %v471_v37, 0.0  ;;  %v1820_v41 = vpop.f32.mrb[3].mxu1  ;;  %v2079_v39 = vld [vmem:[#allocation25 + $0x8] sm:$0xff]  }
 0x309   :  { %v1664_v41 = vld [vmem:[%s3062_s16] ss:$0 sm:$0xff] }
 0x30a   :  { %v477_v42 = vpack.c.bf16 %v476_v40, %v476_v40  ;;  %v2080_v40 = vld [vmem:[#allocation25 + $0x10] sm:$0xff]  }
 0x30c   :  { %1838 = vmatmul.mubr.bf16.vlgmr.msra.gmra.mrb[4].mxu0 %v477_v42  ;;  %v2081_v42 = vld [vmem:[#allocation25 + $0x18] sm:$0xff]  }
 0x30d   :  { %1877 = vmatprep.mubr.msk.bf16.mxu0 %vm2513_vm0, %v2514_v1  ;;  %1862 = vmatpush3.bf16.msra.mxu0 %v2054_v44 }
 0x30e   :  { %1863 = vmatprep.subr.bf16.mxu0 %v2514_v1 }
 0x311   :  { %1864 = vmatpush3.bf16.msra.mxu0 %v2055_v45 }
 0x312   :  { %1865 = vmatprep.subr.bf16.mxu0 %v2514_v1 }
 0x315   :  { %1866 = vmatpush3.bf16.msra.mxu0 %v2056_v46 }
 0x316   :  { %1867 = vmatprep.subr.bf16.mxu0 %v2514_v1 }
 0x319   :  { %1868 = vmatpush3.bf16.msra.mxu0 %v2057_v47 }
 0x31a   :  { %1869 = vmatprep.subr.bf16.mxu0 %v2514_v1 }
 0x31d   :  { %1870 = vmatpush3.bf16.msra.mxu0 %v2058_v48 }
 0x31e   :  { %1871 = vmatprep.subr.bf16.mxu0 %v2514_v1 }
 0x321   :  { %1872 = vmatpush3.bf16.msra.mxu0 %v2059_v49  ;;  %v2082_v49 = vld [vmem:[#allocation25 + $0x20] sm:$0xff]  }
 0x322   :  { %1873 = vmatprep.subr.bf16.mxu0 %v2514_v1 }
 0x325   :  { %1874 = vmatpush3.bf16.msra.mxu0 %v2060_v50 }
 0x326   :  { %1875 = vmatprep.subr.bf16.mxu0 %v2514_v1 }
 0x329   :  { %1876 = vmatpush3.bf16.msra.mxu0 %v2061_v63 }
 0x32a   :  { %1890 = vmatprep.subr.bf16.mxu0 %v2514_v1 }
 0x3df   :  { %v583_v54 = vpop.f32.mrb[4].mxu0 }
 0x3e0   :  { %v584_v55 = vadd.f32 %v1635_v51, %v583_v54  ;;  %v1839_v56 = vpop.f32.mrb[5].mxu0  ;;  %v2083_v51 = vld [vmem:[#allocation25 + $0x28] sm:$0xff]   ;;  %v2086_v54 = vld [vmem:[#allocation26] sm:$0xff]  }
 0x3e1   :  { %v586_v57 = vpop.f32.mrb[6].mxu0  ;;  %v2088_v56 = vld [vmem:[#allocation26 + $0x10] sm:$0xff]  }
 0x3e2   :  { %v589_v59 = vpack.c.bf16 %v584_v55, %v584_v55  ;;  %v1840_v60 = vpop.f32.mrb[7].mxu0  ;;  %v2087_v55 = vld [vmem:[#allocation26 + $0x8] sm:$0xff]   ;;  %v2089_v57 = vld [vmem:[#allocation26 + $0x18] sm:$0xff]  }
 0x3e4   :  { %1858 = vmatmul.mubr.bf16.vlgmr.msra.gmra.mrb[4].mxu1 %v589_v59  ;;  %v2091_v59 = vld [vmem:[#allocation26 + $0x28] sm:$0xff]  }
 0x3e5   :  { %1989 = vmatpush3.bf16.msra.mxu1 %v1988_v58  ;;  %1887 = vmatprep.mubr.msk.f32.mxu1 %vm2513_vm0, %v2514_v1  ;;  %v2090_v58 = vld [vmem:[#allocation26 + $0x20] sm:$0xff]  }
 0x3e6   :  { %1885 = vmatprep.subr.mxu1 %v2514_v1 }
 0x3e9   :  { %1886 = vmatpush3.msra.mxu1 %v817_v61 }
 0x3ea   :  { %1910 = vmatprep.subr.bf16.mxu1 %v2514_v1 }
 0x3ec   :  { %1888 = vmatmul.mubr.msk.f32.vlgmr.msra.gmra.mrb[8].mxu1 %vm825_vm2, %v814_v62  ;;  %v1673_v62 = vld [vmem:[%s3064_s18] ss:$0 sm:$0xff]  ;;  %s3095_s18 = sld [smem:[#allocation47_spill]] }
 0x3ed   :  { %1926 = vmatprep.mubr.msk.bf16.mxu1 %vm2513_vm0, %v2514_v1  ;;  %1911 = vmatpush3.bf16.msra.mxu1 %v2070_v23 }
 0x3ee   :  { %1912 = vmatprep.subr.bf16.mxu1 %v2514_v1 }
 0x3f1   :  { %1913 = vmatpush3.bf16.msra.mxu1 %v2071_v24 }
 0x3f2   :  { %1914 = vmatprep.subr.bf16.mxu1 %v2514_v1 }
 0x3f5   :  { %1915 = vmatpush3.bf16.msra.mxu1 %v2072_v25  ;;  %v1472_v25 = vld [vmem:[%s3097_s21] sm:$0xff] }
 0x3f6   :  { %1916 = vmatprep.subr.bf16.mxu1 %v2514_v1 }
 0x3f9   :  { %1917 = vmatpush3.bf16.msra.mxu1 %v2073_v26  ;;  %v2515_v26 = vmov 0  }
 0x3fa   :  { %1918 = vmatprep.subr.bf16.mxu1 %v2514_v1  ;;  %2028 = vset.pattern.permute.xlu1 %v2515_v26 }
 0x3fb   :  { %2029 = vset.pattern.permute.xlu0 %v2515_v26  ;;  %1474 = vperm.xlu1 %2028, %v1472_v25  }
 0x3fd   :  { %1919 = vmatpush3.bf16.msra.mxu1 %v2074_v27 }
 0x3fe   :  { %1920 = vmatprep.subr.bf16.mxu1 %v2514_v1 }
 0x401   :  { %1921 = vmatpush3.bf16.msra.mxu1 %v2075_v28 }
 0x402   :  { %1922 = vmatprep.subr.bf16.mxu1 %v2514_v1 }
 0x405   :  { %1923 = vmatpush3.bf16.msra.mxu1 %v2076_v29 }
 0x406   :  { %1924 = vmatprep.subr.bf16.mxu1 %v2514_v1 }
 0x409   :  { %1925 = vmatpush3.bf16.msra.mxu1 %v2077_v30 }
 0x40a   :  { %1950 = vmatprep.subr.bf16.mxu1 %v2514_v1 }
 0x4b7   :  { %v695_v2 = vpop.f32.mrb[4].mxu1 }
 0x4b8   :  { %v696_v3 = vadd.f32 %v1644_v0, %v695_v2  ;;  %v1859_v4 = vpop.f32.mrb[5].mxu1 }
 0x4b9   :  { %v698_v5 = vpop.f32.mrb[6].mxu1 }
 0x4ba   :  { %v701_v6 = vmax.f32 %v696_v3, 0.0  ;;  %v1860_v7 = vpop.f32.mrb[7].mxu1 }
 0x4bc   :  { %v702_v9 = vpack.c.bf16 %v701_v6, %v701_v6 }
 0x4be   :  { %1878 = vmatmul.mubr.bf16.vlgmr.msra.gmra.mrb[8].mxu0 %v702_v9  ;;  %v2093_v9 = vld [vmem:[#allocation26 + $0x38] sm:$0xff]  }
 0x4bf   :  { %1891 = vmatpush3.bf16.msra.mxu0 %v2062_v8  ;;  %v895_v11 = vpop.f32.mrb[8].mxu1  ;;  %1906 = vmatprep.mubr.msk.bf16.mxu0 %vm2513_vm0, %v2514_v1  ;;  %v2092_v8 = vld [vmem:[#allocation26 + $0x30] sm:$0xff]  }
 0x4c0   :  { %1892 = vmatprep.subr.bf16.mxu0 %v2514_v1  ;;  %v1889_v12 = vpop.f32.mrb[9].mxu1  ;;  %v896_v18 = vadd.f32 %v1662_v17, %v895_v11 }
 0x4c2   :  { %v899_v20 = vmax.f32 %v896_v18, 0.0  ;;  %v1691_v18 = vld [vmem:[%s3096_s12] ss:$0 sm:$0xff] }
 0x4c3   :  { %1893 = vmatpush3.bf16.msra.mxu0 %v2063_v10  ;;  %v1682_v10 = vld [vmem:[%s3095_s18] ss:$0 sm:$0xff] }
 0x4c4   :  { %1894 = vmatprep.subr.bf16.mxu0 %v2514_v1  ;;  %v900_v22 = vpack.c.bf16 %v899_v20, %v899_v20 }
 0x4c7   :  { %1895 = vmatpush3.bf16.msra.mxu0 %v2064_v13 }
 0x4c8   :  { %1896 = vmatprep.subr.bf16.mxu0 %v2514_v1 }
 0x4cb   :  { %1897 = vmatpush3.bf16.msra.mxu0 %v2065_v14 }
 0x4cc   :  { %1898 = vmatprep.subr.bf16.mxu0 %v2514_v1 }
 0x4cf   :  { %1899 = vmatpush3.bf16.msra.mxu0 %v2066_v15 }
 0x4d0   :  { %1900 = vmatprep.subr.bf16.mxu0 %v2514_v1 }
 0x4d3   :  { %1901 = vmatpush3.bf16.msra.mxu0 %v2067_v16 }
 0x4d4   :  { %1902 = vmatprep.subr.bf16.mxu0 %v2514_v1 }
 0x4d7   :  { %1903 = vmatpush3.bf16.msra.mxu0 %v2068_v19 }
 0x4d8   :  { %1904 = vmatprep.subr.bf16.mxu0 %v2514_v1 }
 0x4db   :  { %1905 = vmatpush3.bf16.msra.mxu0 %v2069_v21 }
 0x4dc   :  { %1930 = vmatprep.subr.bf16.mxu0 %v2514_v1 }
 0x4de   :  { %1907 = vmatmul.mubr.bf16.vlgmr.msra.gmra.mrb[12].mxu0 %v900_v22 }
 0x4df   :  { %1946 = vmatprep.mubr.msk.bf16.mxu0 %vm2513_vm0, %v2514_v1  ;;  %1931 = vmatpush3.bf16.msra.mxu0 %v2078_v38 }
 0x4e0   :  { %1932 = vmatprep.subr.bf16.mxu0 %v2514_v1 }
 0x4e3   :  { %1933 = vmatpush3.bf16.msra.mxu0 %v2079_v39 }
 0x4e4   :  { %1934 = vmatprep.subr.bf16.mxu0 %v2514_v1 }
 0x4e7   :  { %1935 = vmatpush3.bf16.msra.mxu0 %v2080_v40 }
 0x4e8   :  { %1936 = vmatprep.subr.bf16.mxu0 %v2514_v1 }
 0x4eb   :  { %1937 = vmatpush3.bf16.msra.mxu0 %v2081_v42 }
 0x4ec   :  { %1938 = vmatprep.subr.bf16.mxu0 %v2514_v1 }
 0x4ef   :  { %1939 = vmatpush3.bf16.msra.mxu0 %v2082_v49 }
 0x4f0   :  { %1940 = vmatprep.subr.bf16.mxu0 %v2514_v1 }
 0x4f3   :  { %1941 = vmatpush3.bf16.msra.mxu0 %v2083_v51 }
 0x4f4   :  { %1942 = vmatprep.subr.bf16.mxu0 %v2514_v1 }
 0x4f7   :  { %1943 = vmatpush3.bf16.msra.mxu0 %v2084_v52 }
 0x4f8   :  { %1944 = vmatprep.subr.bf16.mxu0 %v2514_v1 }
 0x4fb   :  { %1945 = vmatpush3.bf16.msra.mxu0 %v2085_v53 }
 0x591   :  { %v808_v32 = vpop.f32.mrb[8].mxu0 }
 0x592   :  { %v2972_v33 = vadd.f32 %v1653_v31, %v808_v32  ;;  %v1879_v34 = vpop.f32.mrb[9].mxu0  ;;  %v1439_v32 = vlaneseq }
 0x593   :  { %v811_v35 = vpop.f32.mrb[10].mxu0 }
 0x594   :  { %v1880_v36 = vpop.f32.mrb[11].mxu0  ;;  %v1350_v37 = vmul.f32 %v2972_v33, %v2972_v33  ;;  %v1443_v34 = vand.u32 127, %v1439_v32  ;;  %v2516_v35 = vmov 1.0   ;;  %v1440_v51 = vshrl.u32 %v1439_v32, 7 }
 0x595   :  { %v2517_v36 = vmov 1.0|1.0  }
 0x596   :  { %1352 = vadd.xlane.f32.xlu0 %v1350_v37  ;;  %v1441_v52 = vadd.s32 8, %v1440_v51  ;;  %vm1444_vm5 = vcmp.eq.s32.totalorder %v1440_v51, %v1443_v34 }
 0x597   :  { %vm1556_vm8 = vmxor %vm1444_vm5, %vm2518_vm7 }
 0x598   :  { %vm1445_vm9 = vcmp.eq.s32.totalorder %v1441_v52, %v1443_v34 }
 0x599   :  { %vm1557_vm12 = vmxor %vm1445_vm9, %vm2518_vm7 }
 0x5b1   :  { %v1006_v43 = vpop.f32.mrb[12].mxu0 }
 0x5b2   :  { %v1007_v44 = vadd.f32 %v1664_v41, %v1006_v43  ;;  %v1908_v45 = vpop.f32.mrb[13].mxu0 }
 0x5b3   :  { %v1009_v46 = vpop.f32.mrb[14].mxu0 }
 0x5b4   :  { %v1012_v47 = vmax.f32 %v1007_v44, 0.0  ;;  %v1909_v48 = vpop.f32.mrb[15].mxu0 }
 0x5b6   :  { %v1013_v50 = vpack.c.bf16 %v1012_v47, %v1012_v47 }
 0x5b8   :  { %1927 = vmatmul.mubr.bf16.vlgmr.msra.gmra.mrb[12].mxu1 %v1013_v50 }
 0x5b9   :  { %1966 = vmatprep.mubr.msk.bf16.mxu1 %vm2513_vm0, %v2514_v1  ;;  %1951 = vmatpush3.bf16.msra.mxu1 %v2086_v54 }
 0x5ba   :  { %1952 = vmatprep.subr.bf16.mxu1 %v2514_v1 }
 0x5bd   :  { %1953 = vmatpush3.bf16.msra.mxu1 %v2087_v55 }
 0x5be   :  { %1954 = vmatprep.subr.bf16.mxu1 %v2514_v1 }
 0x5c1   :  { %1955 = vmatpush3.bf16.msra.mxu1 %v2088_v56 }
 0x5c2   :  { %1956 = vmatprep.subr.bf16.mxu1 %v2514_v1 }
 0x5c5   :  { %1957 = vmatpush3.bf16.msra.mxu1 %v2089_v57 }
 0x5c6   :  { %1958 = vmatprep.subr.bf16.mxu1 %v2514_v1 }
 0x5c9   :  { %1959 = vmatpush3.bf16.msra.mxu1 %v2090_v58 }
 0x5ca   :  { %1960 = vmatprep.subr.bf16.mxu1 %v2514_v1 }
 0x5cd   :  { %1961 = vmatpush3.bf16.msra.mxu1 %v2091_v59 }
 0x5ce   :  { %1962 = vmatprep.subr.bf16.mxu1 %v2514_v1 }
 0x5d1   :  { %1963 = vmatpush3.bf16.msra.mxu1 %v2092_v8 }
 0x5d2   :  { %1964 = vmatprep.subr.bf16.mxu1 %v2514_v1 }
 0x5d5   :  { %1965 = vmatpush3.bf16.msra.mxu1 %v2093_v9 }
 0x623   :  { %v1353_v60 = vpop.xlane.xlu0 %1352 }
 0x624   :  { %v1356_v61 = vadd.f32 1e-12, %v1353_v60 }
 0x626   :  { %2094 = vrsqrt.f32 %v1356_v61 }
 0x630   :  { %v2095_v0 = vpop.eup %2094 }
 0x631   :  { %v1360_v7 = vmul.f32 %v2095_v0, %v2972_v33  ;;  %v1475_v33 = vpop.permute.xlu1 %1474 }
 0x632   :  { %vm1476_vm3 = vcmp.eq.s32.totalorder %v1475_v33, %v1443_v34 }
 0x633   :  { %vm1994_vm4 = vmpackc.low %vm1476_vm3, %vm1476_vm3 }
 0x634   :  { %1995 = vmatprep.subr.msk.bf16.mxu1 %vm1994_vm4, %v2517_v36 }
 0x68b   :  { %v1119_v63 = vpop.f32.mrb[12].mxu1 }
 0x68c   :  { %v1120_v2 = vadd.f32 %v1673_v62, %v1119_v63  ;;  %v1928_v3 = vpop.f32.mrb[13].mxu1 }
 0x68d   :  { %v1122_v4 = vpop.f32.mrb[14].mxu1 }
 0x68e   :  { %v1125_v5 = vpack.c.bf16 %v1120_v2, %v1120_v2  ;;  %v1929_v6 = vpop.f32.mrb[15].mxu1 }
 0x690   :  { %1947 = vmatmul.mubr.bf16.vlgmr.msra.gmra.mrb[16].mxu0 %v1125_v5 }
 0x691   :  { %1974 = vmatprep.mubr.f32.mxu0 %v1360_v7 }
 0x763   :  { %v1231_v11 = vpop.f32.mrb[16].mxu0 }
 0x764   :  { %v1232_v12 = vadd.f32 %v1682_v10, %v1231_v11  ;;  %v1948_v13 = vpop.f32.mrb[17].mxu0 }
 0x765   :  { %v1234_v14 = vpop.f32.mrb[18].mxu0 }
 0x766   :  { %v1237_v15 = vmax.f32 %v1232_v12, 0.0  ;;  %v1949_v16 = vpop.f32.mrb[19].mxu0 }
 0x768   :  { %v1238_v17 = vpack.c.bf16 %v1237_v15, %v1237_v15 }
 0x76a   :  { %1967 = vmatmul.mubr.bf16.vlgmr.msra.gmra.mrb[16].mxu1 %v1238_v17 }
 0x76b   :  { %1981 = vmatprep.mubr.msk.f32.mxu1 %vm1476_vm3, %v2516_v35  ;;  %1997 = vmatpush3.bf16.xpose.msk.msra.mxu1 %vm1994_vm4, %v2517_v36 }
 0x772   :  { %1982 = vmatmul.mubr.msk.f32.vlgmr.msra.gmra.mrb[10].mxu1 %vm1476_vm3, %v2516_v35 }
 0x83d   :  { %v1344_v19 = vpop.f32.mrb[16].mxu1 }
 0x83e   :  { %v1345_v20 = vadd.f32 %v1691_v18, %v1344_v19  ;;  %v1968_v21 = vpop.f32.mrb[17].mxu1 }
 0x83f   :  { %v1347_v22 = vpop.f32.mrb[18].mxu1 }
 0x840   :  { %v1969_v23 = vpop.f32.mrb[19].mxu1  ;;  %v1351_v24 = vmul.f32 %v1345_v20, %v1345_v20 }
 0x842   :  { %1354 = vadd.xlane.f32.xlu0 %v1351_v24 }
 0x845   :  { %v1983_v43 = vpop.f32.mrb[10].mxu1 }
 0x846   :  { %v1545_v44 = vpop.f32.mrb[11].mxu1  ;;  %vm1555_vm11 = vcmp.gt.f32.partialorder %v1983_v43, 0.5 }
 0x847   :  { %vm1554_vm6 = vcmp.gt.f32.partialorder %v1545_v44, 0.5  ;;  %vm3019_vm13 = vmand %vm1555_vm11, %vm1557_vm12 }
 0x848   :  { %vm3011_vm10 = vmand %vm1554_vm6, %vm1556_vm8  ;;  %v1706_v63 = vsel %vm3019_vm13, 1.0, %v2514_v1 }
 0x849   :  { %v1705_v59 = vsel %vm3011_vm10, 1.0, %v2514_v1  ;;  %v1567_v0 = vsel %vm289_vm1, %v1706_v63, 0.0 }
 0x84a   :  { %v1564_v62 = vsel %vm289_vm1, %v1705_v59, 0.0 }
 0x8cf   :  { %v1355_v27 = vpop.xlane.xlu0 %1354 }
 0x8d0   :  { %v1357_v28 = vadd.f32 1e-12, %v1355_v27 }
 0x8d2   :  { %2096 = vrsqrt.f32 %v1357_v28 }
 0x8dc   :  { %v2097_v29 = vpop.eup %2096 }
 0x8dd   :  { %v1361_v30 = vmul.f32 %v2097_v29, %v1345_v20 }
 0x8df   :  { %v1990_v31 = vpack.c.bf16 %v1361_v30, %v1360_v7 }
 0x8e1   :  { %1991 = vmatprep.subr.bf16.mxu0 %v1990_v31 }
 0x8e2   :  { %1993 = vmatpush3.bf16.xpose.msra.mxu0 %v1990_v31 }
 0x8e9   :  { %1975 = vmatmul.mubr.f32.vlgmr.msra.gmra.mrb[2].mxu0 %v1361_v30 }
 0x9bc   :  { %v1976_v37 = vpop.f32.mrb[2].mxu0 }
 0x9bd   :  { %v1438_v38 = vmul.f32 14.285714, %v1976_v37  ;;  %v1428_v39 = vpop.f32.mrb[3].mxu0 }
 0x9be   :  { %v1437_v40 = vmul.f32 14.285714, %v1428_v39 }
 0x9bf   :  { %v1449_v41 = vsel %vm289_vm1, %v1438_v38, -inf }
 0x9c0   :  { %1450 = vmax.xlane.f32.xlu0 %v1449_v41  ;;  %v1446_v42 = vsel %vm289_vm1, %v1437_v40, -inf }
 0x9c1   :  { %1447 = vmax.xlane.f32.xlu1 %v1446_v42 }
 0xa4d   :  { %v1451_v45 = vpop.xlane.xlu0 %1450 }
 0xa4e   :  { %v1453_v46 = vsub.f32 %v1438_v38, %v1451_v45  ;;  %v1448_v47 = vpop.xlane.xlu1 %1447 }
 0xa4f   :  { %v1452_v48 = vsub.f32 %v1437_v40, %v1448_v47 }
 0xa50   :  { %v1456_v49 = vmul.f32 1.442695, %v1453_v46 }
 0xa51   :  { %v1454_v50 = vmul.f32 1.442695, %v1452_v48 }
 0xa52   :  { %2098 = vpow2.f32 %v1456_v49 }
 0xa53   :  { %2100 = vpow2.f32 %v1454_v50 }
 0xa5c   :  { %v2099_v53 = vpop.eup %2098 }
 0xa5d   :  { %v2101_v54 = vpop.eup %2100  ;;  %v1459_v58 = vsel %vm1445_vm9, 0.0, %v2099_v53 }
 0xa5e   :  { %v1458_v55 = vsel %vm1444_vm5, 0.0, %v2101_v54  ;;  %v1463_v60 = vsel %vm289_vm1, %v1459_v58, 0.0 }
 0xa5f   :  { %v1460_v56 = vsel %vm289_vm1, %v1458_v55, 0.0 }
 0xa60   :  { %1461 = vadd.xlane.f32.xlu0 %v1460_v56 }
 0xa64   :  { %1464 = vadd.xlane.f32.xlu0 %v1463_v60 }
 0xa68   :  { %1565 = vadd.xlane.f32.xlu0 %v1564_v62 }
 0xa6c   :  { %1568 = vadd.xlane.f32.xlu0 %v1567_v0 }
 0xaed   :  { %v1462_v2 = vpop.xlane.xlu0 %1461 }
 0xaee   :  { %2102 = vlog2.f32 %v1462_v2 }
 0xaf1   :  { %v1465_v3 = vpop.xlane.xlu0 %1464 }
 0xaf2   :  { %2104 = vlog2.f32 %v1465_v3 }
 0xaf5   :  { %v1566_v13 = vpop.xlane.xlu0 %1565 }
 0xaf6   :  { %v1578_v14 = vmax.f32 %v1566_v13, 1.0 }
 0xaf8   :  { %v2103_v4 = vpop.eup %2102  ;;  %2106 = vrcp.f32 %v1578_v14 }
 0xaf9   :  { %v1467_v5 = vmul.f32 0.6931472, %v2103_v4  ;;  %v1569_v15 = vpop.xlane.xlu0 %1568 }
 0xafa   :  { %v1579_v16 = vmax.f32 %v1569_v15, 1.0 }
 0xafb   :  { %v1470_v6 = vsub.f32 %v1452_v48, %v1467_v5 }
 0xafc   :  { %v2105_v7 = vpop.eup %2104  ;;  %2108 = vrcp.f32 %v1579_v16 }
 0xafd   :  { %v1469_v8 = vmul.f32 0.6931472, %v2105_v7  ;;  %v1570_v9 = vsel %vm3011_vm10, %v1470_v6, 0.0 }
 0xafe   :  { %v1572_v10 = vsel %vm289_vm1, %v1570_v9, 0.0 }
 0xaff   :  { %1573 = vadd.xlane.f32.xlu0 %v1572_v10  ;;  %v1471_v1 = vsub.f32 %v1453_v46, %v1469_v8 }
 0xb01   :  { %v1571_v11 = vsel %vm3019_vm13, %v1471_v1, 0.0 }
 0xb02   :  { %v1575_v12 = vsel %vm289_vm1, %v1571_v11, 0.0  ;;  %v2107_v17 = vpop.eup %2106 }
 0xb03   :  { %1576 = vadd.xlane.f32.xlu0 %v1575_v12 }
 0xb06   :  { %v2109_v20 = vpop.eup %2108 }
 0xb8c   :  { %v1574_v18 = vpop.xlane.xlu0 %1573 }
 0xb8d   :  { %v1581_v19 = vmul.f32 %v2107_v17, %v1574_v18 }
 0xb8f   :  { %v1584_v22 = vmul.f32 -1.0, %v1581_v19 }
 0xb90   :  { %v1577_v21 = vpop.xlane.xlu0 %1576 }
 0xb91   :  { %v1583_v23 = vmul.f32 %v2109_v20, %v1577_v21  ;;  %v1587_v25 = vsel %vm1586_vm14, %v1584_v22, 0.0 }
 0xb93   :  { %v1585_v24 = vmul.f32 -1.0, %v1583_v23 }
 0xb95   :  { %v1588_v26 = vsel %vm1586_vm14, %v1585_v24, 0.0 }
 0xb96   :  { %v1589_v27 = vadd.f32 %v1588_v26, %v1587_v25 }
 0xb98   :  { %1590 = vadd.xlane.f32.xlu0 %v1589_v27 }
 0xc25   :  { %v1591_v28 = vpop.xlane.xlu0 %1590 }
 0xc26   :  { %v1592_v29 = vrot.slane %v1591_v28, 4 }
 0xc28   :  { %v1593_v30 = vadd.f32 %v1592_v29, %v1591_v28 }
 0xc2a   :  { %v1594_v31 = vrot.slane %v1593_v30, 2 }
 0xc2c   :  { %v1595_v32 = vadd.f32 %v1594_v31, %v1593_v30 }
 0xc2e   :  { %v1596_v33 = vrot.slane %v1595_v32, 1 }
 0xc30   :  { %v1597_v34 = vadd.f32 %v1596_v33, %v1595_v32 }
 0xc32   :  { %1998 = vpush %v1597_v34 }
 0xc63   :  { %s1999_s30 = spop %1998 }
 0xc64   :  { %s1599_s26 = smul.f32 0.0625, %s1999_s30 }
 0xc66   :  { %1601 = sst [smem:[#allocation28]] %s1599_s26 }
 0xc67   :  { %2471 = shalt.err (!%p2468_p4)
}
 0xc68   :  { %s2519_s28 = smov [#allocation28]  }
 0xc69   :  { %1609 = dma.smem_to_hbm %s2519_s28, 16, %s3102_s25, [#allocation4]  }
 0xc6a   :  { %2490 = dma.done.wait [#allocation4], 16  }
 0xc6b   :  { %2491 = vsyncadd [#allocation4], 4294967280 }
 0xc6c   :  { %1613 = sfence }
 0xc6d   :  { %1614 = vsyncpa [#allocation3], 1 }
 0xc6e   :  { %1615 = vsyncpa [#allocation6], 1 }
 0xc6f   :  { %1616 = vsyncpa [#allocation9], 1 }
 0xc70   :  { %1617 = vsyncpa [#allocation12], 1 }
 0xc71   :  { %1618 = vsyncpa [#allocation15], 1 }
 0xc72   :  { %1619 = vsyncpa [#allocation18], 1 }
 0xc73   :  { %1620 = vsyncpa [#allocation21], 1 }
 0xc74   :  { %1621 = vsyncpa [#allocation24], 1 }
 0xc75   :  { %1622 = vsyncpa [#allocation27], 1 }
 0xc76   :  { %1623 = vsyncpa [#allocation4], 1 }

</bundles_post_ra>
